<compile_context>
chip_gen: v6e
topology: v6e:2x2x1
jax: 0.10.0
libtpu: 0.0.40
codegen_flags: <defaults>
</compile_context>

<pallas_src>
import math
import functools

import numpy as np
import jax
import jax.numpy as jnp
from jax import lax
from jax.experimental import pallas as pl
from jax.experimental.pallas import tpu as pltpu


# ----------------------------------------------------------------------------
# Kernel: one grid step == one batch element; the whole transformer block is
# computed inside the kernel (LN -> QKV -> rotary -> causal attention -> proj
# -> residual -> LN -> MLP -> residual). Everything is 2-D (row, lane) ops.
# ----------------------------------------------------------------------------
def block_kernel(x_ref, cos_q_ref, sin_q_ref, cos_k_ref, sin_k_ref, p_rot_ref,
                 ln1_w_ref, ln1_b_ref,
                 w_attn_ref, b_attn_ref,
                 w_cproj_ref, b_cproj_ref,
                 ln2_w_ref, ln2_b_ref,
                 w_fc_ref, b_fc_ref,
                 w_mproj_ref, b_mproj_ref,
                 o_ref,
                 *, n_head, head_dim, causal):
    T = x_ref.shape[1]
    C = x_ref.shape[2]
    H, D = n_head, head_dim
    f32, bf16 = jnp.float32, jnp.bfloat16

    x = x_ref[0]                          # (T, C) f32

    def layer_norm(h, w, b):
        mu = jnp.mean(h, axis=-1, keepdims=True)
        var = jnp.mean(jnp.square(h - mu), axis=-1, keepdims=True)
        return (h - mu) * lax.rsqrt(var + 1e-5) * w + b

    # Hoisted loop-invariants (tables, rotation matrix, causal mask).
    cos_q = cos_q_ref[...]                # (T, D) f32, scale folded in
    sin_q = sin_q_ref[...]
    cos_k = cos_k_ref[...]
    sin_k = sin_k_ref[...]
    p_rot = p_rot_ref[...]                # (D, D) bf16 signed permutation

    if causal:
        row = lax.broadcasted_iota(jnp.int32, (T, T), 0)
        col = lax.broadcasted_iota(jnp.int32, (T, T), 1)
        keep = col <= row

    # -------------------- attention branch --------------------
    h1 = layer_norm(x, ln1_w_ref[0], ln1_b_ref[0])
    qkv = jnp.dot(h1.astype(bf16), w_attn_ref[...],
                  preferred_element_type=f32) + b_attn_ref[0]        # (T, 3C) f32

    def rotate_half(u):
        # (T, D) -> (T, D): -u[:, i+half] for i<half, u[:, i-half] for half<=i<rot,
        # zeros on the pass-through lanes (harmless: sin == 0 there).
        return jnp.dot(u.astype(bf16), p_rot, preferred_element_type=f32)

    att_out = jnp.zeros((T, C), f32)
    for hh in range(H):                   # static unroll over heads
        lo = hh * D
        qh = qkv[:, lo:lo + D]                       # (T, D) f32
        kh = qkv[:, C + lo:C + lo + D]
        vh = qkv[:, 2 * C + lo:2 * C + lo + D].astype(bf16)

        # full-head-width rotary; 1/sqrt(D) already folded into cos_q / sin_q
        qh = qh * cos_q + rotate_half(qh) * sin_q
        kh = kh * cos_k + rotate_half(kh) * sin_k

        # scores = (q * scale) . k^T  -- contraction over D, no explicit kh.T
        s = lax.dot_general(qh.astype(bf16), kh.astype(bf16),
                            (((1,), (1,)), ((), ())),
                            preferred_element_type=f32)              # (T, T)
        if causal:
            s = jnp.where(keep, s, -1e30)
        s = s - jnp.max(s, axis=-1, keepdims=True)
        p = jnp.exp(s)
        p = p * pl.reciprocal(jnp.sum(p, axis=-1, keepdims=True), approx=True)

        yh = jnp.dot(p.astype(bf16), vh, preferred_element_type=f32)  # (T, D)
        # fold this head's output straight into c_proj (per-head (D, C) slab),
        # accumulating in f32 -- no (T, C) concatenate needed.
        att_out = att_out + jnp.dot(yh.astype(bf16), w_cproj_ref[hh],
                                    preferred_element_type=f32)

    x1 = x + att_out + b_cproj_ref[0]

    # -------------------- MLP branch --------------------
    h2 = layer_norm(x1, ln2_w_ref[0], ln2_b_ref[0])
    f = jnp.dot(h2.astype(bf16), w_fc_ref[...],
                preferred_element_type=f32) + b_fc_ref[0]
    f = 0.5 * f * (1.0 + lax.erf(f * (1.0 / math.sqrt(2.0))))        # exact GELU
    f = jnp.dot(f.astype(bf16), w_mproj_ref[...],
                preferred_element_type=f32) + b_mproj_ref[0]

    o_ref[0] = (x1 + f).astype(o_ref.dtype)


# ----------------------------------------------------------------------------
# Rotary cos/sin tables (same recipe as the PyTorch RotaryEmbedding buffer).
# ----------------------------------------------------------------------------
def rotary_cos_sin(T, rot_dim):
    inv_freq = 1.0 / (10000.0 ** (jnp.arange(0, rot_dim, 2, dtype=jnp.float32) / rot_dim))
    t = jnp.arange(T, dtype=jnp.float32)
    freqs = jnp.einsum("i,j->ij", t, inv_freq)
    emb = jnp.concatenate([freqs, freqs], axis=-1)      # (T, rot_dim)
    return jnp.cos(emb), jnp.sin(emb)


# ----------------------------------------------------------------------------
# Wrapper
# ----------------------------------------------------------------------------
def block_forward(x, params, *, n_head, causal=True):
    B, T, C = x.shape
    H = n_head
    D = C // H
    rot = int(D * 0.5)
    half = rot // 2
    assert H * D == C, "n_embd must be divisible by n_head"
    assert rot % 2 == 0, "rotary_ndims must be even"

    (ln1_w, ln1_b, w_attn, b_attn, w_cp, b_cp,
     ln2_w, ln2_b, w_fc, b_fc, w_mp, b_mp) = params

    # rotary tables at full head width; cos=1 / sin=0 on pass-through lanes;
    # the 1/sqrt(D) softmax scale is folded into the q tables.
    cos_r, sin_r = rotary_cos_sin(T, rot)                          # (T, rot)
    cos_full = jnp.concatenate([cos_r, jnp.ones((T, D - rot), jnp.float32)], axis=-1)
    sin_full = jnp.concatenate([sin_r, jnp.zeros((T, D - rot), jnp.float32)], axis=-1)
    scale = 1.0 / math.sqrt(D)
    cos_q, sin_q = cos_full * scale, sin_full * scale
    cos_k, sin_k = cos_full, sin_full

    # Signed rotate-half permutation: (u @ P)[:, i] = -u[:, i+half]  (i < half)
    #                                                +u[:, i-half]  (half <= i < rot)
    #                                                 0             (i >= rot)
    p_np = np.zeros((D, D), np.float32)
    p_np[np.arange(half) + half, np.arange(half)] = -1.0
    p_np[np.arange(half, rot) - half, np.arange(half, rot)] = 1.0
    p_rot = jnp.asarray(p_np).astype(jnp.bfloat16)

    # bf16 weights for the MXU (halves resident weight VMEM); biases/LN stay f32.
    bf16 = jnp.bfloat16
    w_attn_b = w_attn.astype(bf16)                  # (C, 3C)
    w_cp_b = w_cp.astype(bf16).reshape(H, D, C)     # per-head c_proj slabs
    w_fc_b = w_fc.astype(bf16)                      # (C, 4C)
    w_mp_b = w_mp.astype(bf16)                      # (4C, C)

    kernel = functools.partial(block_kernel, n_head=H, head_dim=D, causal=causal)

    def full(shape):
        return pl.BlockSpec(shape, lambda b, _n=len(shape): (0,) * _n)

    in_specs = [
        pl.BlockSpec((1, T, C), lambda b: (b, 0, 0)),   # x (per batch element)
        full((T, D)), full((T, D)),                     # cos_q, sin_q (scaled)
        full((T, D)), full((T, D)),                     # cos_k, sin_k
        full((D, D)),                                   # rotate-half permutation
        full((1, C)), full((1, C)),                     # ln_1 weight / bias
        full((C, 3 * C)), full((1, 3 * C)),             # c_attn
        full((H, D, C)), full((1, C)),                  # attn c_proj (per head) / bias
        full((1, C)), full((1, C)),                     # ln_2 weight / bias
        full((C, 4 * C)), full((1, 4 * C)),             # mlp c_fc
        full((4 * C, C)), full((1, C)),                 # mlp c_proj
    ]

    return pl.pallas_call(
        kernel,
        out_shape=jax.ShapeDtypeStruct((B, T, C), x.dtype),
        grid=(B,),
        in_specs=in_specs,
        out_specs=pl.BlockSpec((1, T, C), lambda b: (b, 0, 0)),
        compiler_params=pltpu.CompilerParams(dimension_semantics=("parallel",)),
    )(x, cos_q, sin_q, cos_k, sin_k, p_rot,
      ln1_w, ln1_b, w_attn_b, b_attn, w_cp_b, b_cp,
      ln2_w, ln2_b, w_fc_b, b_fc, w_mp_b, b_mp)


# ----------------------------------------------------------------------------
# Pure-JAX f32 reference (mirrors the PyTorch forward) for a correctness check
# ----------------------------------------------------------------------------
def reference_block(x, params, *, n_head):
    (ln1_w, ln1_b, w_attn, b_attn, w_cp, b_cp,
     ln2_w, ln2_b, w_fc, b_fc, w_mp, b_mp) = params
    B, T, C = x.shape
    hd = C // n_head
    rot = int(hd * 0.5)
    cos, sin = rotary_cos_sin(T, rot)

    def ln(h, w, b):
        mu = h.mean(-1, keepdims=True)
        var = ((h - mu) ** 2).mean(-1, keepdims=True)
        return (h - mu) / jnp.sqrt(var + 1e-5) * w[0] + b[0]

    h = ln(x, ln1_w, ln1_b)
    qkv = h @ w_attn + b_attn[0]
    q, k, v = jnp.split(qkv, 3, axis=-1)

    def heads(t):
        return t.reshape(B, T, n_head, hd).transpose(0, 2, 1, 3)

    q, k, v = heads(q), heads(k), heads(v)

    def rotate_half(u):
        u1, u2 = u[..., :u.shape[-1] // 2], u[..., u.shape[-1] // 2:]
        return jnp.concatenate([-u2, u1], -1)

    qr, qp = q[..., :rot], q[..., rot:]
    kr, kp = k[..., :rot], k[..., rot:]
    qr = qr * cos + rotate_half(qr) * sin
    kr = kr * cos + rotate_half(kr) * sin
    q = jnp.concatenate([qr, qp], -1)
    k = jnp.concatenate([kr, kp], -1)

    att = jnp.einsum("bhqd,bhkd->bhqk", q, k) / math.sqrt(hd)
    mask = jnp.tril(jnp.ones((T, T), bool))
    att = jnp.where(mask, att, -jnp.inf)
    att = jax.nn.softmax(att, axis=-1)
    y = jnp.einsum("bhqk,bhkd->bhqd", att, v)
    y = y.transpose(0, 2, 1, 3).reshape(B, T, C)
    y = y @ w_cp + b_cp[0]
    x1 = x + y

    h2 = ln(x1, ln2_w, ln2_b)
    f = h2 @ w_fc + b_fc[0]
    f = 0.5 * f * (1.0 + lax.erf(f / math.sqrt(2.0)))
    f = f @ w_mp + b_mp[0]
    return x1 + f


if __name__ == "__main__":
    # config: n_embd=32, n_head=4, bias=True, dropout=0.0, bidirectional=False
    B, T, C, n_head = 2, 8, 32, 4

    key = jax.random.PRNGKey(0)
    kx, *ks = jax.random.split(key, 9)

    def init(k, shape):
        return 0.02 * jax.random.normal(k, shape, dtype=jnp.float32)

    params = (
        jnp.ones((1, C), jnp.float32),   # ln_1 weight
        jnp.zeros((1, C), jnp.float32),  # ln_1 bias
        init(ks[0], (C, 3 * C)),         # c_attn weight (in, out)
        init(ks[1], (1, 3 * C)),         # c_attn bias
        init(ks[2], (C, C)),             # attn c_proj weight
        init(ks[3], (1, C)),             # attn c_proj bias
        jnp.ones((1, C), jnp.float32),   # ln_2 weight
        jnp.zeros((1, C), jnp.float32),  # ln_2 bias
        init(ks[4], (C, 4 * C)),         # mlp c_fc weight
        init(ks[5], (1, 4 * C)),         # mlp c_fc bias
        init(ks[6], (4 * C, C)),         # mlp c_proj weight
        init(ks[7], (1, C)),             # mlp c_proj bias
    )

    x = jax.random.normal(kx, (B, T, C), dtype=jnp.float32)

    out = block_forward(x, params, n_head=n_head, causal=True)
    out = jax.block_until_ready(out)

    ref = reference_block(x, params, n_head=n_head)
    max_err = float(jnp.max(jnp.abs(out - ref)))
    # bf16 MXU inputs (f32 accumulation) vs an all-f32 reference -> loose tol.
    assert max_err < 2e-2, f"max abs err {max_err}"

    print("KERNEL_OK")
</pallas_src>

<mosaic_0001>
module attributes {stable_mosaic.version = 11 : i64} {
  func.func @block_kernel(%arg0: i32, %arg1: memref<1x8x32xf32, #tpu.memory_space<vmem>>, %arg2: memref<8x8xf32, #tpu.memory_space<vmem>>, %arg3: memref<8x8xf32, #tpu.memory_space<vmem>>, %arg4: memref<8x8xf32, #tpu.memory_space<vmem>>, %arg5: memref<8x8xf32, #tpu.memory_space<vmem>>, %arg6: memref<8x8xbf16, #tpu.memory_space<vmem>>, %arg7: memref<1x32xf32, #tpu.memory_space<vmem>>, %arg8: memref<1x32xf32, #tpu.memory_space<vmem>>, %arg9: memref<32x96xbf16, #tpu.memory_space<vmem>>, %arg10: memref<1x96xf32, #tpu.memory_space<vmem>>, %arg11: memref<4x8x32xbf16, #tpu.memory_space<vmem>>, %arg12: memref<1x32xf32, #tpu.memory_space<vmem>>, %arg13: memref<1x32xf32, #tpu.memory_space<vmem>>, %arg14: memref<1x32xf32, #tpu.memory_space<vmem>>, %arg15: memref<32x128xbf16, #tpu.memory_space<vmem>>, %arg16: memref<1x128xf32, #tpu.memory_space<vmem>>, %arg17: memref<128x32xbf16, #tpu.memory_space<vmem>>, %arg18: memref<1x32xf32, #tpu.memory_space<vmem>>, %arg19: memref<1x8x32xf32, #tpu.memory_space<vmem>>) attributes {dimension_semantics = [#tpu.dimension_semantics<parallel>], iteration_bounds = array<i64: 2>, scalar_prefetch = 0 : i64, scratch_operands = 0 : i64, tpu.core_type = #tpu.core_type<tc>, window_params = [{transform_indices = @transform_0, window_bounds = array<i64: 1, 8, 32>}, {pipeline_mode = #tpu.pipeline_mode<synchronous>, transform_indices = @transform_1, window_bounds = array<i64: 8, 8>}, {pipeline_mode = #tpu.pipeline_mode<synchronous>, transform_indices = @transform_2, window_bounds = array<i64: 8, 8>}, {pipeline_mode = #tpu.pipeline_mode<synchronous>, transform_indices = @transform_3, window_bounds = array<i64: 8, 8>}, {pipeline_mode = #tpu.pipeline_mode<synchronous>, transform_indices = @transform_4, window_bounds = array<i64: 8, 8>}, {pipeline_mode = #tpu.pipeline_mode<synchronous>, transform_indices = @transform_5, window_bounds = array<i64: 8, 8>}, {pipeline_mode = #tpu.pipeline_mode<synchronous>, transform_indices = @transform_6, window_bounds = array<i64: 1, 32>}, {pipeline_mode = #tpu.pipeline_mode<synchronous>, transform_indices = @transform_7, window_bounds = array<i64: 1, 32>}, {pipeline_mode = #tpu.pipeline_mode<synchronous>, transform_indices = @transform_8, window_bounds = array<i64: 32, 96>}, {pipeline_mode = #tpu.pipeline_mode<synchronous>, transform_indices = @transform_9, window_bounds = array<i64: 1, 96>}, {pipeline_mode = #tpu.pipeline_mode<synchronous>, transform_indices = @transform_10, window_bounds = array<i64: 4, 8, 32>}, {pipeline_mode = #tpu.pipeline_mode<synchronous>, transform_indices = @transform_11, window_bounds = array<i64: 1, 32>}, {pipeline_mode = #tpu.pipeline_mode<synchronous>, transform_indices = @transform_12, window_bounds = array<i64: 1, 32>}, {pipeline_mode = #tpu.pipeline_mode<synchronous>, transform_indices = @transform_13, window_bounds = array<i64: 1, 32>}, {pipeline_mode = #tpu.pipeline_mode<synchronous>, transform_indices = @transform_14, window_bounds = array<i64: 32, 128>}, {pipeline_mode = #tpu.pipeline_mode<synchronous>, transform_indices = @transform_15, window_bounds = array<i64: 1, 128>}, {pipeline_mode = #tpu.pipeline_mode<synchronous>, transform_indices = @transform_16, window_bounds = array<i64: 128, 32>}, {pipeline_mode = #tpu.pipeline_mode<synchronous>, transform_indices = @transform_17, window_bounds = array<i64: 1, 32>}, {transform_indices = @transform_18, window_bounds = array<i64: 1, 8, 32>}]} {
    %c0 = arith.constant 0 : index
    %c0_0 = arith.constant 0 : index
    %c0_1 = arith.constant 0 : index
    %0 = vector.load %arg1[%c0, %c0_0, %c0_1] : memref<1x8x32xf32, #tpu.memory_space<vmem>>, vector<1x8x32xf32>
    %1 = vector.shape_cast %0 : vector<1x8x32xf32> to vector<8x32xf32>
    %c0_2 = arith.constant 0 : index
    %c0_3 = arith.constant 0 : index
    %2 = vector.load %arg2[%c0_2, %c0_3] : memref<8x8xf32, #tpu.memory_space<vmem>>, vector<8x8xf32>
    %c0_4 = arith.constant 0 : index
    %c0_5 = arith.constant 0 : index
    %3 = vector.load %arg3[%c0_4, %c0_5] : memref<8x8xf32, #tpu.memory_space<vmem>>, vector<8x8xf32>
    %c0_6 = arith.constant 0 : index
    %c0_7 = arith.constant 0 : index
    %4 = vector.load %arg4[%c0_6, %c0_7] : memref<8x8xf32, #tpu.memory_space<vmem>>, vector<8x8xf32>
    %c0_8 = arith.constant 0 : index
    %c0_9 = arith.constant 0 : index
    %5 = vector.load %arg5[%c0_8, %c0_9] : memref<8x8xf32, #tpu.memory_space<vmem>>, vector<8x8xf32>
    %c0_10 = arith.constant 0 : index
    %c0_11 = arith.constant 0 : index
    %6 = vector.load %arg6[%c0_10, %c0_11] : memref<8x8xbf16, #tpu.memory_space<vmem>>, vector<8x8xbf16>
    %7 = tpu.iota {dimensions = array<i32: 0>} : vector<8x8xi32>
    %8 = tpu.iota {dimensions = array<i32: 1>} : vector<8x8xi32>
    %9 = arith.cmpi sle, %8, %7 : vector<8x8xi32>
    %c0_12 = arith.constant 0 : index
    %c0_13 = arith.constant 0 : index
    %10 = vector.load %arg7[%c0_12, %c0_13] : memref<1x32xf32, #tpu.memory_space<vmem>>, vector<1x32xf32>
    %11 = vector.shape_cast %10 : vector<1x32xf32> to vector<32xf32>
    %c0_14 = arith.constant 0 : index
    %c0_15 = arith.constant 0 : index
    %12 = vector.load %arg8[%c0_14, %c0_15] : memref<1x32xf32, #tpu.memory_space<vmem>>, vector<1x32xf32>
    %13 = vector.shape_cast %12 : vector<1x32xf32> to vector<32xf32>
    %cst = arith.constant dense<0.000000e+00> : vector<8xf32>
    %14 = vector.multi_reduction <add>, %1, %cst [1] : vector<8x32xf32> to vector<8xf32>
    %15 = vector.shape_cast %14 : vector<8xf32> to vector<8x1xf32>
    %cst_16 = arith.constant 3.200000e+01 : f32
    %16 = vector.broadcast %cst_16 : f32 to vector<8x1xf32>
    %17 = arith.divf %15, %16 : vector<8x1xf32>
    %18 = vector.broadcast %17 : vector<8x1xf32> to vector<8x32xf32>
    %19 = arith.subf %1, %18 : vector<8x32xf32>
    %20 = arith.mulf %19, %19 : vector<8x32xf32>
    %cst_17 = arith.constant dense<0.000000e+00> : vector<8xf32>
    %21 = vector.multi_reduction <add>, %20, %cst_17 [1] : vector<8x32xf32> to vector<8xf32>
    %22 = vector.shape_cast %21 : vector<8xf32> to vector<8x1xf32>
    %cst_18 = arith.constant 3.200000e+01 : f32
    %23 = vector.broadcast %cst_18 : f32 to vector<8x1xf32>
    %24 = arith.divf %22, %23 : vector<8x1xf32>
    %25 = vector.broadcast %17 : vector<8x1xf32> to vector<8x32xf32>
    %26 = arith.subf %1, %25 : vector<8x32xf32>
    %cst_19 = arith.constant 9.99999974E-6 : f32
    %27 = vector.broadcast %cst_19 : f32 to vector<8x1xf32>
    %28 = arith.addf %24, %27 : vector<8x1xf32>
    %29 = math.rsqrt %28 : vector<8x1xf32>
    %30 = vector.broadcast %29 : vector<8x1xf32> to vector<8x32xf32>
    %31 = arith.mulf %26, %30 : vector<8x32xf32>
    %32 = vector.shape_cast %11 : vector<32xf32> to vector<1x32xf32>
    %33 = vector.broadcast %32 : vector<1x32xf32> to vector<8x32xf32>
    %34 = arith.mulf %31, %33 : vector<8x32xf32>
    %35 = vector.shape_cast %13 : vector<32xf32> to vector<1x32xf32>
    %36 = vector.broadcast %35 : vector<1x32xf32> to vector<8x32xf32>
    %37 = arith.addf %34, %36 : vector<8x32xf32>
    %38 = arith.truncf %37 : vector<8x32xf32> to vector<8x32xbf16>
    %c0_20 = arith.constant 0 : index
    %c0_21 = arith.constant 0 : index
    %39 = vector.load %arg9[%c0_20, %c0_21] : memref<32x96xbf16, #tpu.memory_space<vmem>>, vector<32x96xbf16>
    %cst_22 = arith.constant dense<0.000000e+00> : vector<8x96xf32>
    %40 = tpu.matmul %38, %39, %cst_22 {dimension_numbers = #tpu.dot_dimension_numbers<[1], [0], [0], [1], [0, 0, 1, 1], [], []>} : vector<8x32xbf16>, vector<32x96xbf16>, vector<8x96xf32> -> vector<8x96xf32>
    %c0_23 = arith.constant 0 : index
    %c0_24 = arith.constant 0 : index
    %41 = vector.load %arg10[%c0_23, %c0_24] : memref<1x96xf32, #tpu.memory_space<vmem>>, vector<1x96xf32>
    %42 = vector.shape_cast %41 : vector<1x96xf32> to vector<96xf32>
    %43 = vector.shape_cast %42 : vector<96xf32> to vector<1x96xf32>
    %44 = vector.broadcast %43 : vector<1x96xf32> to vector<8x96xf32>
    %45 = arith.addf %40, %44 : vector<8x96xf32>
    %cst_25 = arith.constant 0.000000e+00 : f32
    %46 = vector.broadcast %cst_25 : f32 to vector<8x32xf32>
    %47 = vector.extract_strided_slice %45 {offsets = [0, 0], sizes = [8, 8], strides = [1, 1]} : vector<8x96xf32> to vector<8x8xf32>
    %48 = vector.extract_strided_slice %45 {offsets = [0, 32], sizes = [8, 8], strides = [1, 1]} : vector<8x96xf32> to vector<8x8xf32>
    %49 = vector.extract_strided_slice %45 {offsets = [0, 64], sizes = [8, 8], strides = [1, 1]} : vector<8x96xf32> to vector<8x8xf32>
    %50 = arith.truncf %49 : vector<8x8xf32> to vector<8x8xbf16>
    %51 = arith.mulf %47, %2 : vector<8x8xf32>
    %52 = arith.truncf %47 : vector<8x8xf32> to vector<8x8xbf16>
    %cst_26 = arith.constant dense<0.000000e+00> : vector<8x8xf32>
    %53 = tpu.matmul %52, %6, %cst_26 {dimension_numbers = #tpu.dot_dimension_numbers<[1], [0], [0], [1], [0, 0, 1, 1], [], []>} : vector<8x8xbf16>, vector<8x8xbf16>, vector<8x8xf32> -> vector<8x8xf32>
    %54 = arith.mulf %53, %3 : vector<8x8xf32>
    %55 = arith.addf %51, %54 : vector<8x8xf32>
    %56 = arith.mulf %48, %4 : vector<8x8xf32>
    %57 = arith.truncf %48 : vector<8x8xf32> to vector<8x8xbf16>
    %cst_27 = arith.constant dense<0.000000e+00> : vector<8x8xf32>
    %58 = tpu.matmul %57, %6, %cst_27 {dimension_numbers = #tpu.dot_dimension_numbers<[1], [0], [0], [1], [0, 0, 1, 1], [], []>} : vector<8x8xbf16>, vector<8x8xbf16>, vector<8x8xf32> -> vector<8x8xf32>
    %59 = arith.mulf %58, %5 : vector<8x8xf32>
    %60 = arith.addf %56, %59 : vector<8x8xf32>
    %61 = arith.truncf %55 : vector<8x8xf32> to vector<8x8xbf16>
    %62 = arith.truncf %60 : vector<8x8xf32> to vector<8x8xbf16>
    %cst_28 = arith.constant dense<0.000000e+00> : vector<8x8xf32>
    %63 = tpu.matmul %61, %62, %cst_28 {dimension_numbers = #tpu.dot_dimension_numbers<[1], [1], [0], [0], [0, 0, 1, 0], [], []>} : vector<8x8xbf16>, vector<8x8xbf16>, vector<8x8xf32> -> vector<8x8xf32>
    %cst_29 = arith.constant -1.000000e+30 : f32
    %64 = vector.broadcast %cst_29 : f32 to vector<8x8xf32>
    %65 = arith.select %9, %63, %64 : vector<8x8xi1>, vector<8x8xf32>
    %cst_30 = arith.constant dense<0xFF800000> : vector<8xf32>
    %66 = vector.multi_reduction <maximumf>, %65, %cst_30 [1] : vector<8x8xf32> to vector<8xf32>
    %67 = vector.shape_cast %66 : vector<8xf32> to vector<8x1xf32>
    %68 = vector.broadcast %67 : vector<8x1xf32> to vector<8x8xf32>
    %69 = arith.subf %65, %68 : vector<8x8xf32>
    %70 = math.exp %69 : vector<8x8xf32>
    %cst_31 = arith.constant dense<0.000000e+00> : vector<8xf32>
    %71 = vector.multi_reduction <add>, %70, %cst_31 [1] : vector<8x8xf32> to vector<8xf32>
    %72 = vector.shape_cast %71 : vector<8xf32> to vector<8x1xf32>
    %73 = tpu.reciprocal %72 {approx = true} : vector<8x1xf32> -> vector<8x1xf32>
    %74 = vector.broadcast %73 : vector<8x1xf32> to vector<8x8xf32>
    %75 = arith.mulf %70, %74 : vector<8x8xf32>
    %76 = arith.truncf %75 : vector<8x8xf32> to vector<8x8xbf16>
    %cst_32 = arith.constant dense<0.000000e+00> : vector<8x8xf32>
    %77 = tpu.matmul %76, %50, %cst_32 {dimension_numbers = #tpu.dot_dimension_numbers<[1], [0], [0], [1], [0, 0, 1, 1], [], []>} : vector<8x8xbf16>, vector<8x8xbf16>, vector<8x8xf32> -> vector<8x8xf32>
    %78 = arith.truncf %77 : vector<8x8xf32> to vector<8x8xbf16>
    %c0_33 = arith.constant 0 : index
    %c0_34 = arith.constant 0 : index
    %c0_35 = arith.constant 0 : index
    %79 = vector.load %arg11[%c0_33, %c0_34, %c0_35] : memref<4x8x32xbf16, #tpu.memory_space<vmem>>, vector<1x8x32xbf16>
    %80 = vector.shape_cast %79 : vector<1x8x32xbf16> to vector<8x32xbf16>
    %cst_36 = arith.constant dense<0.000000e+00> : vector<8x32xf32>
    %81 = tpu.matmul %78, %80, %cst_36 {dimension_numbers = #tpu.dot_dimension_numbers<[1], [0], [0], [1], [0, 0, 1, 1], [], []>} : vector<8x8xbf16>, vector<8x32xbf16>, vector<8x32xf32> -> vector<8x32xf32>
    %82 = arith.addf %46, %81 : vector<8x32xf32>
    %83 = vector.extract_strided_slice %45 {offsets = [0, 8], sizes = [8, 8], strides = [1, 1]} : vector<8x96xf32> to vector<8x8xf32>
    %84 = vector.extract_strided_slice %45 {offsets = [0, 40], sizes = [8, 8], strides = [1, 1]} : vector<8x96xf32> to vector<8x8xf32>
    %85 = vector.extract_strided_slice %45 {offsets = [0, 72], sizes = [8, 8], strides = [1, 1]} : vector<8x96xf32> to vector<8x8xf32>
    %86 = arith.truncf %85 : vector<8x8xf32> to vector<8x8xbf16>
    %87 = arith.mulf %83, %2 : vector<8x8xf32>
    %88 = arith.truncf %83 : vector<8x8xf32> to vector<8x8xbf16>
    %cst_37 = arith.constant dense<0.000000e+00> : vector<8x8xf32>
    %89 = tpu.matmul %88, %6, %cst_37 {dimension_numbers = #tpu.dot_dimension_numbers<[1], [0], [0], [1], [0, 0, 1, 1], [], []>} : vector<8x8xbf16>, vector<8x8xbf16>, vector<8x8xf32> -> vector<8x8xf32>
    %90 = arith.mulf %89, %3 : vector<8x8xf32>
    %91 = arith.addf %87, %90 : vector<8x8xf32>
    %92 = arith.mulf %84, %4 : vector<8x8xf32>
    %93 = arith.truncf %84 : vector<8x8xf32> to vector<8x8xbf16>
    %cst_38 = arith.constant dense<0.000000e+00> : vector<8x8xf32>
    %94 = tpu.matmul %93, %6, %cst_38 {dimension_numbers = #tpu.dot_dimension_numbers<[1], [0], [0], [1], [0, 0, 1, 1], [], []>} : vector<8x8xbf16>, vector<8x8xbf16>, vector<8x8xf32> -> vector<8x8xf32>
    %95 = arith.mulf %94, %5 : vector<8x8xf32>
    %96 = arith.addf %92, %95 : vector<8x8xf32>
    %97 = arith.truncf %91 : vector<8x8xf32> to vector<8x8xbf16>
    %98 = arith.truncf %96 : vector<8x8xf32> to vector<8x8xbf16>
    %cst_39 = arith.constant dense<0.000000e+00> : vector<8x8xf32>
    %99 = tpu.matmul %97, %98, %cst_39 {dimension_numbers = #tpu.dot_dimension_numbers<[1], [1], [0], [0], [0, 0, 1, 0], [], []>} : vector<8x8xbf16>, vector<8x8xbf16>, vector<8x8xf32> -> vector<8x8xf32>
    %cst_40 = arith.constant -1.000000e+30 : f32
    %100 = vector.broadcast %cst_40 : f32 to vector<8x8xf32>
    %101 = arith.select %9, %99, %100 : vector<8x8xi1>, vector<8x8xf32>
    %cst_41 = arith.constant dense<0xFF800000> : vector<8xf32>
    %102 = vector.multi_reduction <maximumf>, %101, %cst_41 [1] : vector<8x8xf32> to vector<8xf32>
    %103 = vector.shape_cast %102 : vector<8xf32> to vector<8x1xf32>
    %104 = vector.broadcast %103 : vector<8x1xf32> to vector<8x8xf32>
    %105 = arith.subf %101, %104 : vector<8x8xf32>
    %106 = math.exp %105 : vector<8x8xf32>
    %cst_42 = arith.constant dense<0.000000e+00> : vector<8xf32>
    %107 = vector.multi_reduction <add>, %106, %cst_42 [1] : vector<8x8xf32> to vector<8xf32>
    %108 = vector.shape_cast %107 : vector<8xf32> to vector<8x1xf32>
    %109 = tpu.reciprocal %108 {approx = true} : vector<8x1xf32> -> vector<8x1xf32>
    %110 = vector.broadcast %109 : vector<8x1xf32> to vector<8x8xf32>
    %111 = arith.mulf %106, %110 : vector<8x8xf32>
    %112 = arith.truncf %111 : vector<8x8xf32> to vector<8x8xbf16>
    %cst_43 = arith.constant dense<0.000000e+00> : vector<8x8xf32>
    %113 = tpu.matmul %112, %86, %cst_43 {dimension_numbers = #tpu.dot_dimension_numbers<[1], [0], [0], [1], [0, 0, 1, 1], [], []>} : vector<8x8xbf16>, vector<8x8xbf16>, vector<8x8xf32> -> vector<8x8xf32>
    %114 = arith.truncf %113 : vector<8x8xf32> to vector<8x8xbf16>
    %c1 = arith.constant 1 : index
    %c0_44 = arith.constant 0 : index
    %c0_45 = arith.constant 0 : index
    %115 = vector.load %arg11[%c1, %c0_44, %c0_45] : memref<4x8x32xbf16, #tpu.memory_space<vmem>>, vector<1x8x32xbf16>
    %116 = vector.shape_cast %115 : vector<1x8x32xbf16> to vector<8x32xbf16>
    %cst_46 = arith.constant dense<0.000000e+00> : vector<8x32xf32>
    %117 = tpu.matmul %114, %116, %cst_46 {dimension_numbers = #tpu.dot_dimension_numbers<[1], [0], [0], [1], [0, 0, 1, 1], [], []>} : vector<8x8xbf16>, vector<8x32xbf16>, vector<8x32xf32> -> vector<8x32xf32>
    %118 = arith.addf %82, %117 : vector<8x32xf32>
    %119 = vector.extract_strided_slice %45 {offsets = [0, 16], sizes = [8, 8], strides = [1, 1]} : vector<8x96xf32> to vector<8x8xf32>
    %120 = vector.extract_strided_slice %45 {offsets = [0, 48], sizes = [8, 8], strides = [1, 1]} : vector<8x96xf32> to vector<8x8xf32>
    %121 = vector.extract_strided_slice %45 {offsets = [0, 80], sizes = [8, 8], strides = [1, 1]} : vector<8x96xf32> to vector<8x8xf32>
    %122 = arith.truncf %121 : vector<8x8xf32> to vector<8x8xbf16>
    %123 = arith.mulf %119, %2 : vector<8x8xf32>
    %124 = arith.truncf %119 : vector<8x8xf32> to vector<8x8xbf16>
    %cst_47 = arith.constant dense<0.000000e+00> : vector<8x8xf32>
    %125 = tpu.matmul %124, %6, %cst_47 {dimension_numbers = #tpu.dot_dimension_numbers<[1], [0], [0], [1], [0, 0, 1, 1], [], []>} : vector<8x8xbf16>, vector<8x8xbf16>, vector<8x8xf32> -> vector<8x8xf32>
    %126 = arith.mulf %125, %3 : vector<8x8xf32>
    %127 = arith.addf %123, %126 : vector<8x8xf32>
    %128 = arith.mulf %120, %4 : vector<8x8xf32>
    %129 = arith.truncf %120 : vector<8x8xf32> to vector<8x8xbf16>
    %cst_48 = arith.constant dense<0.000000e+00> : vector<8x8xf32>
    %130 = tpu.matmul %129, %6, %cst_48 {dimension_numbers = #tpu.dot_dimension_numbers<[1], [0], [0], [1], [0, 0, 1, 1], [], []>} : vector<8x8xbf16>, vector<8x8xbf16>, vector<8x8xf32> -> vector<8x8xf32>
    %131 = arith.mulf %130, %5 : vector<8x8xf32>
    %132 = arith.addf %128, %131 : vector<8x8xf32>
    %133 = arith.truncf %127 : vector<8x8xf32> to vector<8x8xbf16>
    %134 = arith.truncf %132 : vector<8x8xf32> to vector<8x8xbf16>
    %cst_49 = arith.constant dense<0.000000e+00> : vector<8x8xf32>
    %135 = tpu.matmul %133, %134, %cst_49 {dimension_numbers = #tpu.dot_dimension_numbers<[1], [1], [0], [0], [0, 0, 1, 0], [], []>} : vector<8x8xbf16>, vector<8x8xbf16>, vector<8x8xf32> -> vector<8x8xf32>
    %cst_50 = arith.constant -1.000000e+30 : f32
    %136 = vector.broadcast %cst_50 : f32 to vector<8x8xf32>
    %137 = arith.select %9, %135, %136 : vector<8x8xi1>, vector<8x8xf32>
    %cst_51 = arith.constant dense<0xFF800000> : vector<8xf32>
    %138 = vector.multi_reduction <maximumf>, %137, %cst_51 [1] : vector<8x8xf32> to vector<8xf32>
    %139 = vector.shape_cast %138 : vector<8xf32> to vector<8x1xf32>
    %140 = vector.broadcast %139 : vector<8x1xf32> to vector<8x8xf32>
    %141 = arith.subf %137, %140 : vector<8x8xf32>
    %142 = math.exp %141 : vector<8x8xf32>
    %cst_52 = arith.constant dense<0.000000e+00> : vector<8xf32>
    %143 = vector.multi_reduction <add>, %142, %cst_52 [1] : vector<8x8xf32> to vector<8xf32>
    %144 = vector.shape_cast %143 : vector<8xf32> to vector<8x1xf32>
    %145 = tpu.reciprocal %144 {approx = true} : vector<8x1xf32> -> vector<8x1xf32>
    %146 = vector.broadcast %145 : vector<8x1xf32> to vector<8x8xf32>
    %147 = arith.mulf %142, %146 : vector<8x8xf32>
    %148 = arith.truncf %147 : vector<8x8xf32> to vector<8x8xbf16>
    %cst_53 = arith.constant dense<0.000000e+00> : vector<8x8xf32>
    %149 = tpu.matmul %148, %122, %cst_53 {dimension_numbers = #tpu.dot_dimension_numbers<[1], [0], [0], [1], [0, 0, 1, 1], [], []>} : vector<8x8xbf16>, vector<8x8xbf16>, vector<8x8xf32> -> vector<8x8xf32>
    %150 = arith.truncf %149 : vector<8x8xf32> to vector<8x8xbf16>
    %c2 = arith.constant 2 : index
    %c0_54 = arith.constant 0 : index
    %c0_55 = arith.constant 0 : index
    %151 = vector.load %arg11[%c2, %c0_54, %c0_55] : memref<4x8x32xbf16, #tpu.memory_space<vmem>>, vector<1x8x32xbf16>
    %152 = vector.shape_cast %151 : vector<1x8x32xbf16> to vector<8x32xbf16>
    %cst_56 = arith.constant dense<0.000000e+00> : vector<8x32xf32>
    %153 = tpu.matmul %150, %152, %cst_56 {dimension_numbers = #tpu.dot_dimension_numbers<[1], [0], [0], [1], [0, 0, 1, 1], [], []>} : vector<8x8xbf16>, vector<8x32xbf16>, vector<8x32xf32> -> vector<8x32xf32>
    %154 = arith.addf %118, %153 : vector<8x32xf32>
    %155 = vector.extract_strided_slice %45 {offsets = [0, 24], sizes = [8, 8], strides = [1, 1]} : vector<8x96xf32> to vector<8x8xf32>
    %156 = vector.extract_strided_slice %45 {offsets = [0, 56], sizes = [8, 8], strides = [1, 1]} : vector<8x96xf32> to vector<8x8xf32>
    %157 = vector.extract_strided_slice %45 {offsets = [0, 88], sizes = [8, 8], strides = [1, 1]} : vector<8x96xf32> to vector<8x8xf32>
    %158 = arith.truncf %157 : vector<8x8xf32> to vector<8x8xbf16>
    %159 = arith.mulf %155, %2 : vector<8x8xf32>
    %160 = arith.truncf %155 : vector<8x8xf32> to vector<8x8xbf16>
    %cst_57 = arith.constant dense<0.000000e+00> : vector<8x8xf32>
    %161 = tpu.matmul %160, %6, %cst_57 {dimension_numbers = #tpu.dot_dimension_numbers<[1], [0], [0], [1], [0, 0, 1, 1], [], []>} : vector<8x8xbf16>, vector<8x8xbf16>, vector<8x8xf32> -> vector<8x8xf32>
    %162 = arith.mulf %161, %3 : vector<8x8xf32>
    %163 = arith.addf %159, %162 : vector<8x8xf32>
    %164 = arith.mulf %156, %4 : vector<8x8xf32>
    %165 = arith.truncf %156 : vector<8x8xf32> to vector<8x8xbf16>
    %cst_58 = arith.constant dense<0.000000e+00> : vector<8x8xf32>
    %166 = tpu.matmul %165, %6, %cst_58 {dimension_numbers = #tpu.dot_dimension_numbers<[1], [0], [0], [1], [0, 0, 1, 1], [], []>} : vector<8x8xbf16>, vector<8x8xbf16>, vector<8x8xf32> -> vector<8x8xf32>
    %167 = arith.mulf %166, %5 : vector<8x8xf32>
    %168 = arith.addf %164, %167 : vector<8x8xf32>
    %169 = arith.truncf %163 : vector<8x8xf32> to vector<8x8xbf16>
    %170 = arith.truncf %168 : vector<8x8xf32> to vector<8x8xbf16>
    %cst_59 = arith.constant dense<0.000000e+00> : vector<8x8xf32>
    %171 = tpu.matmul %169, %170, %cst_59 {dimension_numbers = #tpu.dot_dimension_numbers<[1], [1], [0], [0], [0, 0, 1, 0], [], []>} : vector<8x8xbf16>, vector<8x8xbf16>, vector<8x8xf32> -> vector<8x8xf32>
    %cst_60 = arith.constant -1.000000e+30 : f32
    %172 = vector.broadcast %cst_60 : f32 to vector<8x8xf32>
    %173 = arith.select %9, %171, %172 : vector<8x8xi1>, vector<8x8xf32>
    %cst_61 = arith.constant dense<0xFF800000> : vector<8xf32>
    %174 = vector.multi_reduction <maximumf>, %173, %cst_61 [1] : vector<8x8xf32> to vector<8xf32>
    %175 = vector.shape_cast %174 : vector<8xf32> to vector<8x1xf32>
    %176 = vector.broadcast %175 : vector<8x1xf32> to vector<8x8xf32>
    %177 = arith.subf %173, %176 : vector<8x8xf32>
    %178 = math.exp %177 : vector<8x8xf32>
    %cst_62 = arith.constant dense<0.000000e+00> : vector<8xf32>
    %179 = vector.multi_reduction <add>, %178, %cst_62 [1] : vector<8x8xf32> to vector<8xf32>
    %180 = vector.shape_cast %179 : vector<8xf32> to vector<8x1xf32>
    %181 = tpu.reciprocal %180 {approx = true} : vector<8x1xf32> -> vector<8x1xf32>
    %182 = vector.broadcast %181 : vector<8x1xf32> to vector<8x8xf32>
    %183 = arith.mulf %178, %182 : vector<8x8xf32>
    %184 = arith.truncf %183 : vector<8x8xf32> to vector<8x8xbf16>
    %cst_63 = arith.constant dense<0.000000e+00> : vector<8x8xf32>
    %185 = tpu.matmul %184, %158, %cst_63 {dimension_numbers = #tpu.dot_dimension_numbers<[1], [0], [0], [1], [0, 0, 1, 1], [], []>} : vector<8x8xbf16>, vector<8x8xbf16>, vector<8x8xf32> -> vector<8x8xf32>
    %186 = arith.truncf %185 : vector<8x8xf32> to vector<8x8xbf16>
    %c3 = arith.constant 3 : index
    %c0_64 = arith.constant 0 : index
    %c0_65 = arith.constant 0 : index
    %187 = vector.load %arg11[%c3, %c0_64, %c0_65] : memref<4x8x32xbf16, #tpu.memory_space<vmem>>, vector<1x8x32xbf16>
    %188 = vector.shape_cast %187 : vector<1x8x32xbf16> to vector<8x32xbf16>
    %cst_66 = arith.constant dense<0.000000e+00> : vector<8x32xf32>
    %189 = tpu.matmul %186, %188, %cst_66 {dimension_numbers = #tpu.dot_dimension_numbers<[1], [0], [0], [1], [0, 0, 1, 1], [], []>} : vector<8x8xbf16>, vector<8x32xbf16>, vector<8x32xf32> -> vector<8x32xf32>
    %190 = arith.addf %154, %189 : vector<8x32xf32>
    %191 = arith.addf %1, %190 : vector<8x32xf32>
    %c0_67 = arith.constant 0 : index
    %c0_68 = arith.constant 0 : index
    %192 = vector.load %arg12[%c0_67, %c0_68] : memref<1x32xf32, #tpu.memory_space<vmem>>, vector<1x32xf32>
    %193 = vector.shape_cast %192 : vector<1x32xf32> to vector<32xf32>
    %194 = vector.shape_cast %193 : vector<32xf32> to vector<1x32xf32>
    %195 = vector.broadcast %194 : vector<1x32xf32> to vector<8x32xf32>
    %196 = arith.addf %191, %195 : vector<8x32xf32>
    %c0_69 = arith.constant 0 : index
    %c0_70 = arith.constant 0 : index
    %197 = vector.load %arg13[%c0_69, %c0_70] : memref<1x32xf32, #tpu.memory_space<vmem>>, vector<1x32xf32>
    %198 = vector.shape_cast %197 : vector<1x32xf32> to vector<32xf32>
    %c0_71 = arith.constant 0 : index
    %c0_72 = arith.constant 0 : index
    %199 = vector.load %arg14[%c0_71, %c0_72] : memref<1x32xf32, #tpu.memory_space<vmem>>, vector<1x32xf32>
    %200 = vector.shape_cast %199 : vector<1x32xf32> to vector<32xf32>
    %cst_73 = arith.constant dense<0.000000e+00> : vector<8xf32>
    %201 = vector.multi_reduction <add>, %196, %cst_73 [1] : vector<8x32xf32> to vector<8xf32>
    %202 = vector.shape_cast %201 : vector<8xf32> to vector<8x1xf32>
    %cst_74 = arith.constant 3.200000e+01 : f32
    %203 = vector.broadcast %cst_74 : f32 to vector<8x1xf32>
    %204 = arith.divf %202, %203 : vector<8x1xf32>
    %205 = vector.broadcast %204 : vector<8x1xf32> to vector<8x32xf32>
    %206 = arith.subf %196, %205 : vector<8x32xf32>
    %207 = arith.mulf %206, %206 : vector<8x32xf32>
    %cst_75 = arith.constant dense<0.000000e+00> : vector<8xf32>
    %208 = vector.multi_reduction <add>, %207, %cst_75 [1] : vector<8x32xf32> to vector<8xf32>
    %209 = vector.shape_cast %208 : vector<8xf32> to vector<8x1xf32>
    %cst_76 = arith.constant 3.200000e+01 : f32
    %210 = vector.broadcast %cst_76 : f32 to vector<8x1xf32>
    %211 = arith.divf %209, %210 : vector<8x1xf32>
    %212 = vector.broadcast %204 : vector<8x1xf32> to vector<8x32xf32>
    %213 = arith.subf %196, %212 : vector<8x32xf32>
    %cst_77 = arith.constant 9.99999974E-6 : f32
    %214 = vector.broadcast %cst_77 : f32 to vector<8x1xf32>
    %215 = arith.addf %211, %214 : vector<8x1xf32>
    %216 = math.rsqrt %215 : vector<8x1xf32>
    %217 = vector.broadcast %216 : vector<8x1xf32> to vector<8x32xf32>
    %218 = arith.mulf %213, %217 : vector<8x32xf32>
    %219 = vector.shape_cast %198 : vector<32xf32> to vector<1x32xf32>
    %220 = vector.broadcast %219 : vector<1x32xf32> to vector<8x32xf32>
    %221 = arith.mulf %218, %220 : vector<8x32xf32>
    %222 = vector.shape_cast %200 : vector<32xf32> to vector<1x32xf32>
    %223 = vector.broadcast %222 : vector<1x32xf32> to vector<8x32xf32>
    %224 = arith.addf %221, %223 : vector<8x32xf32>
    %225 = arith.truncf %224 : vector<8x32xf32> to vector<8x32xbf16>
    %c0_78 = arith.constant 0 : index
    %c0_79 = arith.constant 0 : index
    %226 = vector.load %arg15[%c0_78, %c0_79] : memref<32x128xbf16, #tpu.memory_space<vmem>>, vector<32x128xbf16>
    %cst_80 = arith.constant dense<0.000000e+00> : vector<8x128xf32>
    %227 = tpu.matmul %225, %226, %cst_80 {dimension_numbers = #tpu.dot_dimension_numbers<[1], [0], [0], [1], [0, 0, 1, 1], [], []>} : vector<8x32xbf16>, vector<32x128xbf16>, vector<8x128xf32> -> vector<8x128xf32>
    %c0_81 = arith.constant 0 : index
    %c0_82 = arith.constant 0 : index
    %228 = vector.load %arg16[%c0_81, %c0_82] : memref<1x128xf32, #tpu.memory_space<vmem>>, vector<1x128xf32>
    %229 = vector.shape_cast %228 : vector<1x128xf32> to vector<128xf32>
    %230 = vector.shape_cast %229 : vector<128xf32> to vector<1x128xf32>
    %231 = vector.broadcast %230 : vector<1x128xf32> to vector<8x128xf32>
    %232 = arith.addf %227, %231 : vector<8x128xf32>
    %cst_83 = arith.constant 5.000000e-01 : f32
    %233 = vector.broadcast %cst_83 : f32 to vector<8x128xf32>
    %234 = arith.mulf %233, %232 : vector<8x128xf32>
    %cst_84 = arith.constant 0.707106769 : f32
    %235 = vector.broadcast %cst_84 : f32 to vector<8x128xf32>
    %236 = arith.mulf %232, %235 : vector<8x128xf32>
    %237 = math.erf %236 : vector<8x128xf32>
    %cst_85 = arith.constant 1.000000e+00 : f32
    %238 = vector.broadcast %cst_85 : f32 to vector<8x128xf32>
    %239 = arith.addf %238, %237 : vector<8x128xf32>
    %240 = arith.mulf %234, %239 : vector<8x128xf32>
    %241 = arith.truncf %240 : vector<8x128xf32> to vector<8x128xbf16>
    %c0_86 = arith.constant 0 : index
    %c0_87 = arith.constant 0 : index
    %242 = vector.load %arg17[%c0_86, %c0_87] : memref<128x32xbf16, #tpu.memory_space<vmem>>, vector<128x32xbf16>
    %cst_88 = arith.constant dense<0.000000e+00> : vector<8x32xf32>
    %243 = tpu.matmul %241, %242, %cst_88 {dimension_numbers = #tpu.dot_dimension_numbers<[1], [0], [0], [1], [0, 0, 1, 1], [], []>} : vector<8x128xbf16>, vector<128x32xbf16>, vector<8x32xf32> -> vector<8x32xf32>
    %c0_89 = arith.constant 0 : index
    %c0_90 = arith.constant 0 : index
    %244 = vector.load %arg18[%c0_89, %c0_90] : memref<1x32xf32, #tpu.memory_space<vmem>>, vector<1x32xf32>
    %245 = vector.shape_cast %244 : vector<1x32xf32> to vector<32xf32>
    %246 = vector.shape_cast %245 : vector<32xf32> to vector<1x32xf32>
    %247 = vector.broadcast %246 : vector<1x32xf32> to vector<8x32xf32>
    %248 = arith.addf %243, %247 : vector<8x32xf32>
    %249 = arith.addf %196, %248 : vector<8x32xf32>
    %c0_91 = arith.constant 0 : index
    %c0_92 = arith.constant 0 : index
    %c0_93 = arith.constant 0 : index
    %250 = vector.load %arg19[%c0_91, %c0_92, %c0_93] : memref<1x8x32xf32, #tpu.memory_space<vmem>>, vector<1x8x32xf32>
    %251 = vector.shape_cast %250 : vector<1x8x32xf32> to vector<8x32xf32>
    %252 = vector.shape_cast %249 : vector<8x32xf32> to vector<1x8x32xf32>
    tpu.vector_store %arg19[%c0_91, %c0_92, %c0_93], %252 {strides = array<i32>} : memref<1x8x32xf32, #tpu.memory_space<vmem>>, vector<1x8x32xf32>,
    return
  }
  func.func @transform_0(%arg0: i32) -> (i32, i32, i32) {
    %c0_i32 = arith.constant 0 : i32
    %c0_i32_0 = arith.constant 0 : i32
    %c0_i32_1 = arith.constant 0 : i32
    return %arg0, %c0_i32, %c0_i32_0 : i32, i32, i32
  }
  func.func @transform_1(%arg0: i32) -> (i32, i32) {
    %c0_i32 = arith.constant 0 : i32
    %c0_i32_0 = arith.constant 0 : i32
    %c0_i32_1 = arith.constant 0 : i32
    return %c0_i32, %c0_i32_0 : i32, i32
  }
  func.func @transform_2(%arg0: i32) -> (i32, i32) {
    %c0_i32 = arith.constant 0 : i32
    %c0_i32_0 = arith.constant 0 : i32
    %c0_i32_1 = arith.constant 0 : i32
    return %c0_i32, %c0_i32_0 : i32, i32
  }
  func.func @transform_3(%arg0: i32) -> (i32, i32) {
    %c0_i32 = arith.constant 0 : i32
    %c0_i32_0 = arith.constant 0 : i32
    %c0_i32_1 = arith.constant 0 : i32
    return %c0_i32, %c0_i32_0 : i32, i32
  }
  func.func @transform_4(%arg0: i32) -> (i32, i32) {
    %c0_i32 = arith.constant 0 : i32
    %c0_i32_0 = arith.constant 0 : i32
    %c0_i32_1 = arith.constant 0 : i32
    return %c0_i32, %c0_i32_0 : i32, i32
  }
  func.func @transform_5(%arg0: i32) -> (i32, i32) {
    %c0_i32 = arith.constant 0 : i32
    %c0_i32_0 = arith.constant 0 : i32
    %c0_i32_1 = arith.constant 0 : i32
    return %c0_i32, %c0_i32_0 : i32, i32
  }
  func.func @transform_6(%arg0: i32) -> (i32, i32) {
    %c0_i32 = arith.constant 0 : i32
    %c0_i32_0 = arith.constant 0 : i32
    %c0_i32_1 = arith.constant 0 : i32
    return %c0_i32, %c0_i32_0 : i32, i32
  }
  func.func @transform_7(%arg0: i32) -> (i32, i32) {
    %c0_i32 = arith.constant 0 : i32
    %c0_i32_0 = arith.constant 0 : i32
    %c0_i32_1 = arith.constant 0 : i32
    return %c0_i32, %c0_i32_0 : i32, i32
  }
  func.func @transform_8(%arg0: i32) -> (i32, i32) {
    %c0_i32 = arith.constant 0 : i32
    %c0_i32_0 = arith.constant 0 : i32
    %c0_i32_1 = arith.constant 0 : i32
    return %c0_i32, %c0_i32_0 : i32, i32
  }
  func.func @transform_9(%arg0: i32) -> (i32, i32) {
    %c0_i32 = arith.constant 0 : i32
    %c0_i32_0 = arith.constant 0 : i32
    %c0_i32_1 = arith.constant 0 : i32
    return %c0_i32, %c0_i32_0 : i32, i32
  }
  func.func @transform_10(%arg0: i32) -> (i32, i32, i32) {
    %c0_i32 = arith.constant 0 : i32
    %c0_i32_0 = arith.constant 0 : i32
    %c0_i32_1 = arith.constant 0 : i32
    %c0_i32_2 = arith.constant 0 : i32
    return %c0_i32, %c0_i32_0, %c0_i32_1 : i32, i32, i32
  }
  func.func @transform_11(%arg0: i32) -> (i32, i32) {
    %c0_i32 = arith.constant 0 : i32
    %c0_i32_0 = arith.constant 0 : i32
    %c0_i32_1 = arith.constant 0 : i32
    return %c0_i32, %c0_i32_0 : i32, i32
  }
  func.func @transform_12(%arg0: i32) -> (i32, i32) {
    %c0_i32 = arith.constant 0 : i32
    %c0_i32_0 = arith.constant 0 : i32
    %c0_i32_1 = arith.constant 0 : i32
    return %c0_i32, %c0_i32_0 : i32, i32
  }
  func.func @transform_13(%arg0: i32) -> (i32, i32) {
    %c0_i32 = arith.constant 0 : i32
    %c0_i32_0 = arith.constant 0 : i32
    %c0_i32_1 = arith.constant 0 : i32
    return %c0_i32, %c0_i32_0 : i32, i32
  }
  func.func @transform_14(%arg0: i32) -> (i32, i32) {
    %c0_i32 = arith.constant 0 : i32
    %c0_i32_0 = arith.constant 0 : i32
    %c0_i32_1 = arith.constant 0 : i32
    return %c0_i32, %c0_i32_0 : i32, i32
  }
  func.func @transform_15(%arg0: i32) -> (i32, i32) {
    %c0_i32 = arith.constant 0 : i32
    %c0_i32_0 = arith.constant 0 : i32
    %c0_i32_1 = arith.constant 0 : i32
    return %c0_i32, %c0_i32_0 : i32, i32
  }
  func.func @transform_16(%arg0: i32) -> (i32, i32) {
    %c0_i32 = arith.constant 0 : i32
    %c0_i32_0 = arith.constant 0 : i32
    %c0_i32_1 = arith.constant 0 : i32
    return %c0_i32, %c0_i32_0 : i32, i32
  }
  func.func @transform_17(%arg0: i32) -> (i32, i32) {
    %c0_i32 = arith.constant 0 : i32
    %c0_i32_0 = arith.constant 0 : i32
    %c0_i32_1 = arith.constant 0 : i32
    return %c0_i32, %c0_i32_0 : i32, i32
  }
  func.func @transform_18(%arg0: i32) -> (i32, i32, i32) {
    %c0_i32 = arith.constant 0 : i32
    %c0_i32_0 = arith.constant 0 : i32
    %c0_i32_1 = arith.constant 0 : i32
    return %arg0, %c0_i32, %c0_i32_0 : i32, i32, i32
  }
}

</mosaic_0001>

<bundles_post_ra>
// kernel: tpu_custom_call.1
= control target key start
LH: loop header
LB: loop body
LE: loop exit
PB: predicated region body
PF: predicated region fallthrough
CT: control target
= control target key end

     0   :  { %s3211_s0 = inlined_call_operand.vmem [shape: f32[2,8,32], index: 0, kind: input, shape index: {}]   ;;  %s3212_s1 = inlined_call_operand.vmem [shape: f32[8,8], index: 1, kind: input, shape index: {}]   ;;  %s3213_s2 = inlined_call_operand.vmem [shape: f32[8,8], index: 2, kind: input, shape index: {}]   ;;  %s3214_s3 = inlined_call_operand.hbm [shape: f32[8,8], index: 3, kind: input, shape index: {}]   ;;  %s3215_s4 = inlined_call_operand.hbm [shape: f32[8,8], index: 4, kind: input, shape index: {}]   ;;  %s3216_s5 = inlined_call_operand.vmem [shape: bf16[8,8], index: 5, kind: input, shape index: {}]   ;;  %s3217_s6 = inlined_call_operand.vmem [shape: f32[1,32], index: 6, kind: input, shape index: {}]   ;;  %s3218_s7 = inlined_call_operand.vmem [shape: f32[1,32], index: 7, kind: input, shape index: {}]   ;;  %s3219_s8 = inlined_call_operand.vmem [shape: bf16[32,96], index: 8, kind: input, shape index: {}]   ;;  %s3220_s9 = inlined_call_operand.vmem [shape: f32[1,96], index: 9, kind: input, shape index: {}]   ;;  %s3221_s10 = inlined_call_operand.vmem [shape: bf16[4,8,32], index: 10, kind: input, shape index: {}]   ;;  %s3222_s11 = inlined_call_operand.vmem [shape: f32[1,32], index: 11, kind: input, shape index: {}]   ;;  %s3223_s12 = inlined_call_operand.vmem [shape: f32[1,32], index: 12, kind: input, shape index: {}]   ;;  %s3224_s13 = inlined_call_operand.vmem [shape: f32[1,32], index: 13, kind: input, shape index: {}]   ;;  %s3225_s14 = inlined_call_operand.vmem [shape: bf16[32,128], index: 14, kind: input, shape index: {}]   ;;  %s3226_s15 = inlined_call_operand.vmem [shape: f32[1,128], index: 15, kind: input, shape index: {}]   ;;  %s3227_s16 = inlined_call_operand.vmem [shape: bf16[128,32], index: 16, kind: input, shape index: {}]   ;;  %s3228_s17 = inlined_call_operand.vmem [shape: f32[1,32], index: 17, kind: input, shape index: {}]   ;;  %s3229_s18 = inlined_call_operand.hbm [shape: f32[2,8,32], index: 18, kind: output, shape index: {}]  }
   0x1   :  { %3237 = sst [smem:[#allocation14_spill]] %s3211_s0 }
   0x2   :  { %3238 = sst [smem:[#allocation15_spill]] %s3212_s1 }
   0x3   :  { %3239 = sst [smem:[#allocation16_spill]] %s3213_s2 }
   0x4   :  { %3240 = sst [smem:[#allocation17_spill]] %s3214_s3 }
   0x5   :  { %3241 = sst [smem:[#allocation18_spill]] %s3215_s4 }
   0x6   :  { %23 = vsyncpa [#allocation3], 0 }
   0x7   :  { %24 = vsyncpa [#allocation6], 0 }
   0x8   :  { %25 = vsyncpa [#allocation4], 0 }
   0x9   :  { %27 = vsyncpa [#allocation4 + $0x1], 0  ;;  %s2738_s27 = smov 0   ;;  %s2740_s28 = smov 0  }
   0xa   :  { %s2742_s29 = smov 0   ;;  %s2744_s30 = smov 0  }
   0xb LB: > { %3242 = sst [smem:[#allocation11_spill]] %s2617_s29  ;;  %s2759_s0 = sadd.s32 4294967295, %s2621_s30   ;;  %s2621_s30 = sphi %s2744_s30, %s3262_s30   ;;  %s2617_s29 = sphi %s2742_s29, %s3264_s29   ;;  %s2613_s28 = sphi %s2740_s28, %s3266_s28   ;;  %s2609_s27 = sphi %s2738_s27, %s3265_s27  }
   0xc   : > { %s2120_s19 = sadd.s32 4294967294, %s2621_s30   ;;  %s2763_s1 = sadd.s32 1, %s2621_s30  }
   0xd   : > { %3243 = sst [smem:[#allocation12_spill]] %s2763_s1  ;;  %s423_s20 = sadd.s32 1, %s2617_s29 }
   0xe   : > { %s420_s21 = ssub.s32 %s2621_s30, %s2763_s1  ;;  %p433_p0 = scmp.ne.s32.totalorder %s2617_s29, %s2613_s28 }
   0xf   : > { %p421_p1 = scmp.eq.s32.totalorder %s420_s21, 0  ;;  %p434_p2 = scmp.eq.s32.totalorder %s2759_s0, 1 }
  0x10   : > { %p439_p3 = scmp.ne.s32.totalorder %s2613_s28, %s2609_s27  ;;  %p440_p4 = scmp.eq.s32.totalorder %s2120_s19, 1 }
  0x11   : > { %s2774_s22 = scalar_select %p421_p1, %s2617_s29, %s423_s20  }
  0x12   : > { %p2776_p5 = por %p434_p2, %p433_p0  ;;  %p2780_p6 = por %p440_p4, %p439_p3 }
  0x13   : > { %3244 = sst [smem:[#allocation13_spill]] %s2774_s22  ;;  %p2121_p7 = scmp.ge.s32.totalorder %s2621_s30, 1 }
  0x14   : > { %s3245_s2 = scalar_select %p2776_p5, 1, 0 }
  0x15   : > { %s3246_s23 = scalar_select %p2780_p6, 1, 0 }
  0x16   : > { %p447_p8 = scmp.lt.s32.totalorder %s2621_s30, 3  ;;  %p3231_p9 = scmp.eq.s32.totalorder %s2759_s0, 0 }
  0x17   : > { %s2623_s25 = smov [#allocation2]   ;;  %s2624_s19 = smov [#allocation5]  }
  0x18   : > { %p2787_p10 = pnand %p2121_p7, %p447_p8  ;;  %s466_s26 = sshll.u32 %s2623_s25, 4  ;;  %s467_s26 = int_to_ptr.vmem [resolvable:$true] %s466_s26 }
  0x19   : > { %s477_s20 = sshll.u32 %s2624_s19, 4  ;;  %s2512_s22 = scalar_lea.vmem %s467_s26, 128  ;;  %s478_s20 = int_to_ptr.vmem [resolvable:$true] %s477_s20 }
  0x1a   : > { %s3247_s24 = scalar_select %p2787_p10, 1, 0 }
  0x1b   : > { %p2400_p11 = pneg %p2787_p10  ;;  %p2513_p0 = scmp.ne.s32.totalorder %s467_s26, %s2512_s22 }
  0x1c   : > { %p2520_p3 = scmp.lt.s32.totalorder %s467_s26, %s467_s26  ;;  %p2521_p4 = scmp.lt.s32.totalorder %s2512_s22, %s2512_s22 }
  0x1d   : > { %p2795_p12 = pnand %p3231_p9, %p2400_p11 }
  0x1e   : > { %p2522_p7 = por %p2521_p4, %p2520_p3 }
  0x1f   : > { %p2503_p13 = pneg %p2795_p12 }
  0x21   : > { %p2515_p1 = pnand %p2513_p0, %p2503_p13 }
  0x23   : > { %p2516_p2 = pneg %p2515_p1 }
  0x25   : > { %p2523_p8 = pnand %p2522_p7, %p2516_p2 }
  0x27   : > { %2526 = shalt.err (!%p2523_p8)
}
  0x28   : > { %s3249_s3 = sld [smem:[#allocation17_spill]]  ;;  %s2538_s29 = scalar_lea.vmem %s478_s20, 128 }
  0x29   : > { %p2539_p11 = scmp.ne.s32.totalorder %s478_s20, %s2538_s29  ;;  %p2546_p0 = scmp.lt.s32.totalorder %s478_s20, %s478_s20 }
  0x2a   : > { %p2547_p1 = scmp.lt.s32.totalorder %s2538_s29, %s2538_s29 }
  0x2b   : > { %p2541_p9 = pnand %p2539_p11, %p2503_p13 }
  0x2c   : > { %p2548_p5 = por %p2547_p1, %p2546_p0 }
  0x2d   : > { %p2542_p6 = pneg %p2541_p9 }
  0x2e   : > { %2403 = dma.hbm_to_vmem [thread:$0]  (!%p2795_p12), %s3249_s3, 128, %s467_s26, [#allocation3]  }
  0x2f   : > { %p2549_p10 = pnand %p2548_p5, %p2542_p6 }
  0x31   : > { %2552 = shalt.err (!%p2549_p10)
}
  0x32   : > { %s3250_s4 = sld [smem:[#allocation18_spill]]  ;;  %p3251_p2 = scmp.ne.s32.totalorder %s3247_s24, 0 }
  0x33   : > { %p3252_p3 = scmp.eq.s32.totalorder (!%p3251_p2), %s2759_s0, 0 }
  0x34   : > { %536 = sbr.rel (%p3251_p2) target bundleno = 6009 (0x1779), region = 92 }
  0x38   : > { %2406 = dma.hbm_to_vmem [thread:$0]  (!%p2795_p12), %s3250_s4, 128, %s478_s20, [#allocation6]  }
  0x39   : > { %2596 = dma.done.wait (%p3252_p3), [#allocation3], 128   ;;  %p3253_p13 = pmov %p3252_p3 }
  0x3a   : > { %p3254_p9 = pmov %p3252_p3 }
  0x3b   : > { %2598 = vsyncadd (%p3253_p13), [#allocation3], 4294967168 }
  0x3c   : > { %2600 = dma.done.wait (%p3254_p9), [#allocation6], 128   ;;  %p3255_p5 = pmov %p3252_p3 }
  0x3d   : > { %p593_p6 = scmp.lt.s32.totalorder %s2759_s0, 1  ;;  %s3256_s20 = sld [smem:[#allocation14_spill]]  ;;  %vm611_vm0 = vcmask 261120   ;;  %v2467_v7 = vld [vmem:[%s3219_s8 + $0x8] sm:$0xff]   ;;  %v2625_v8 = vmov 0.0   ;;  %vm2626_vm1 = vmmov 0   ;;  %v604_v54 = vlaneseq }
  0x3e   : > { %2602 = vsyncadd (%p3255_p5), [#allocation6], 4294967168  ;;  %2234 = vmatprep.subr.bf16.mxu0 %v2625_v8  ;;  %2238 = vmatprep.mubr.msk.bf16.mxu0 %vm2626_vm1, %v2625_v8  ;;  %v2468_v9 = vld [vmem:[%s3219_s8] sm:$0xff]   ;;  %vm713_vm2 = vcmask 1043456   ;;  %vm709_vm3 = vcmask 64512   ;;  %v2891_v35 = vld [vmem:[#allocation5] sm:$0xff] }
  0x3f   : > { %s594_s29 = scalar_select %p593_p6, %s2759_s0, 1  ;;  %2235 = vmatpush3.bf16.msra.mxu0 %v2467_v7  ;;  %2260 = vmatprep.subr.bf16.mxu1 %v2625_v8  ;;  %v2130_v14 = vld [vmem:[%s3217_s6] ss:$0 sm:$0xff]  ;;  %v2915_v55 = vshrl.u32 %v604_v54, 7  ;;  %v2917_v56 = vand.u32 127, %v604_v54 }
  0x40   : > { %2236 = vmatprep.subr.bf16.mxu0 %v2625_v8  ;;  %2262 = vmatprep.mubr.msk.bf16.mxu1 %vm2626_vm1, %v2625_v8  ;;  %v2131_v16 = vld [vmem:[%s3218_s7] ss:$0 sm:$0xff]  ;;  %s3258_s19 = sld [smem:[#allocation15_spill]]  ;;  %s2629_s22 = smov 64  }
  0x41   : > { %s2129_s1 = sshll.u32 %s594_s29, 3  ;;  %v603_v20 = vld [vmem:[%s3216_s5] sm:$0xf]  ;;  %s2627_s29 = smov 96   ;;  %vm608_vm4 = vcmp.le.s32.totalorder %v2917_v56, %v2915_v55 }
  0x42   : > { %v2865_v21 = vsel %vm713_vm2, %v603_v20, 0  ;;  %v2132_v22 = vld [vmem:[%s3220_s9] ss:$0 sm:$0xff]  ;;  %s2632_s26 = smov 88   ;;  %s2633_s24 = smov 8  }
  0x43   : > { %s596_s21 = scalar_lea.vmem %s3256_s20, %s2129_s1  ;;  %2237 = vmatpush3.bf16.msra.mxu0 %v2468_v9  ;;  %v2881_v29 = vld [vmem:[#allocation2] sm:$0xff]  ;;  %s2628_s1 = smov 32  }
  0x44   : > { %v2832_v0 = vld [vmem:[%s596_s21] sm:$0xff]  ;;  %2242 = vmatprep.subr.bf16.mxu0 %v2625_v8  ;;  %s3257_s20 = sld [smem:[#allocation16_spill]]  ;;  %s2635_s21 = smov 112  }
  0x45   : > { %v612_v1 = vsel %vm611_vm0, %v2832_v0, 0.0  ;;  %s2636_s25 = smov 80   ;;  %p3260_p12 = scmp.ne.s32.totalorder %s3245_s2, 0 }
  0x46   : > { %613 = vadd.xlane.f32.xlu0 %v612_v1  ;;  %v2903_v47 = vld [vmem:[%s3258_s19] sm:$0xff]  ;;  %s2637_s19 = smov 48  }
  0x4a   : > { %v2898_v46 = vld [vmem:[%s3257_s20] sm:$0xff]  ;;  %s2634_s20 = smov 56  }
  0xcf   : > { %v614_v2 = vpop.xlane.xlu0 %613 }
  0xd0   : > { %v616_v3 = vmul.f32 0.03125, %v614_v2 }
  0xd2   : > { %v617_v4 = vsub.f32 %v2832_v0, %v616_v3 }
  0xd4   : > { %v618_v5 = vmul.f32 %v617_v4, %v617_v4 }
  0xd6   : > { %v619_v6 = vsel %vm611_vm0, %v618_v5, 0.0 }
  0xd7   : > { %620 = vadd.xlane.f32.xlu0 %v619_v6 }
 0x160   : > { %v621_v10 = vpop.xlane.xlu0 %620 }
 0x161   : > { %v622_v11 = vmul.f32 0.03125, %v621_v10 }
 0x163   : > { %v623_v12 = vadd.f32 1e-05, %v622_v11 }
 0x165   : > { %2479 = vrsqrt.f32 %v623_v12 }
 0x172   : > { %v2480_v13 = vpop.eup %2479 }
 0x173   : > { %v625_v15 = vmul.f32 %v2480_v13, %v617_v4 }
 0x175   : > { %v632_v17 = vmul.f32 %v2130_v14, %v625_v15 }
 0x177   : > { %v639_v18 = vadd.f32 %v2131_v16, %v632_v17 }
 0x179   : > { %v640_v19 = vpack.c.bf16 %v639_v18, %v639_v18 }
 0x17b   : > { %2239 = vmatmul.mubr.msk.bf16.vlgmr.msra.gmra.mxu0 %vm611_vm0, %v640_v19 }
 0x17c   : > { %2244 = vmatprep.mubr.msk.bf16.mxu0 %vm2626_vm1, %v2625_v8  ;;  %2243 = vmatpush3.bf16.msra.mxu0 %v2865_v21 }
 0x17d   : > { %2248 = vmatprep.subr.bf16.mxu0 %v2625_v8 }
 0x23b   : > { %v701_v23 = vpop.f32.mrf.mxu0 }
 0x23c   : > { %v2872_v24 = vadd.f32 %v2132_v22, %v701_v23 }
 0x23d   : > { %v2240_v25 = vpop.f32.mrf.mxu0 }
 0x23e   : > { %v2876_v26 = vpack.c.bf16 %v2872_v24, %v2872_v24  ;;  %v708_v50 = vmul.f32 %v2872_v24, %v2903_v47 }
 0x23f   : > { %v704_v27 = vpop.f32.mrf.mxu0 }
 0x240   : > { %765 = vrot.lane.b32.xlu1 %v2876_v26, %s2627_s29  ;;  %2245 = vmatmul.mubr.msk.bf16.vlgmr.msra.gmra.mxu0 %vm709_vm3, %v2876_v26 }
 0x241   : > { %v2241_v28 = vpop.f32.mrf.mxu0  ;;  %2249 = vmatpush3.bf16.msra.mxu0 %v2865_v21  ;;  %2250 = vmatprep.mubr.msk.bf16.mxu0 %vm2626_vm1, %v2625_v8 }
 0x242   : > { %2254 = vmatprep.subr.bf16.mxu0 %v2625_v8 }
 0x244   : > { %760 = vrot.lane.b32.xlu1 %v2881_v29, %s2628_s1 }
 0x2b2   : > { %v766_v30 = vpop.permute.xlu1 %765 }
 0x2b3   : > { %2251 = vmatmul.mubr.msk.bf16.vlgmr.msra.gmra.mxu0 %vm709_vm3, %v766_v30 }
 0x2b4   : > { %2256 = vmatprep.mubr.msk.bf16.mxu0 %vm2626_vm1, %v2625_v8 }
 0x2b6   : > { %v761_v41 = vpop.permute.xlu1 %760 }
 0x2b7   : > { %v763_v42 = vmul.f32 %v761_v41, %v2872_v24 }
 0x300   : > { %v751_v31 = vpop.f32.mrf.mxu0 }
 0x301   : > { %v757_v48 = vmul.f32 %v751_v31, %v2898_v46 }
 0x302   : > { %v2246_v32 = vpop.f32.mrf.mxu0 }
 0x303   : > { %v758_v52 = vadd.f32 %v757_v48, %v708_v50 }
 0x304   : > { %v754_v33 = vpop.f32.mrf.mxu0 }
 0x305   : > { %v816_v53 = vpack.c.bf16 %v758_v52, %v758_v52 }
 0x306   : > { %v2247_v34 = vpop.f32.mrf.mxu0 }
 0x373   : > { %v804_v36 = vpop.f32.mrf.mxu0 }
 0x374   : > { %v810_v37 = vmul.f32 %v804_v36, %v2891_v35 }
 0x375   : > { %v2252_v38 = vpop.f32.mrf.mxu0 }
 0x376   : > { %812 = vrot.lane.b32.xlu0 %v810_v37, %s2628_s1  ;;  %s3236_s1 = smov 40  }
 0x377   : > { %v807_v39 = vpop.f32.mrf.mxu0 }
 0x379   : > { %v2253_v40 = vpop.f32.mrf.mxu0 }
 0x3e8   : > { %v813_v43 = vpop.permute.xlu0 %812 }
 0x3e9   : > { %v815_v44 = vadd.f32 %v813_v43, %v763_v42 }
 0x3eb   : > { %v817_v45 = vpack.c.bf16 %v815_v44, %v815_v44 }
 0x3ed   : > { %819 = vrot.lane.b32.xlu1 %v817_v45, %s2627_s29  ;;  %s2630_s29 = smov 120  }
 0x45f   : > { %v820_v49 = vpop.permute.xlu1 %819 }
 0x460   : > { %v825_v51 = vsel %vm709_vm3, %v820_v49, 0 }
 0x461   : > { %2255 = vmatpush3.bf16.xpose.msra.mxu0 %v825_v51 }
 0x462   : > { %2266 = vmatprep.subr.bf16.mxu0 %v2625_v8 }
 0x468   : > { %2257 = vmatmul.mubr.msk.bf16.vlgmr.msra.gmra.mxu0 %vm709_vm3, %v816_v53 }
 0x469   : > { %2267 = vmatpush3.bf16.msra.mxu0 %v2865_v21  ;;  %2268 = vmatprep.mubr.msk.bf16.mxu0 %vm2626_vm1, %v2625_v8 }
 0x46a   : > { %2278 = vmatprep.subr.bf16.mxu0 %v2625_v8 }
 0x528   : > { %v861_v57 = vpop.f32.mrf.mxu0 }
 0x529   : > { %v867_v58 = vsel %vm608_vm4, %v861_v57, -1e+30 }
 0x52a   : > { %v2258_v59 = vpop.f32.mrf.mxu0  ;;  %v868_v60 = vsel %vm709_vm3, %v867_v58, -inf }
 0x52b   : > { %869 = vmax.xlane.f32.xlu1 %v868_v60 }
 0x52c   : > { %v864_v61 = vpop.f32.mrf.mxu0 }
 0x52e   : > { %v2259_v62 = vpop.f32.mrf.mxu0 }
 0x53c   : > { %880 = vrot.lane.b32.xlu1 %v2876_v26, %s2629_s22  ;;  %s2638_s22 = smov 16  }
 0x540   : > { %935 = vrot.lane.b32.xlu1 %v2876_v26, %s2630_s29 }
 0x544   : > { %986 = vrot.lane.b32.xlu1 %v2881_v29, %s3236_s1 }
 0x5b4   : > { %v870_v63 = vpop.xlane.xlu1 %869 }
 0x5b5   : > { %v871_v1 = vsub.f32 %v867_v58, %v870_v63  ;;  %v2144_v63 = vld [vmem:[%s3221_s10 + $0x4] sm:$0xf] }
 0x5b7   : > { %v872_v2 = vmul.f32 1.442695, %v871_v1  ;;  %v1163_v1 = vsel %vm713_vm2, %v2144_v63, 0 }
 0x5b8   : > { %v881_v3 = vpop.permute.xlu1 %880 }
 0x5b9   : > { %2481 = vpow2.f32 %v872_v2  ;;  %v886_v4 = vsel %vm713_vm2, %v881_v3, 0 }
 0x5ba   : > { %2261 = vmatpush3.bf16.msra.mxu1 %v886_v4  ;;  %v929_v4 = vld [vmem:[%s3221_s10] sm:$0xf] }
 0x5bb   : > { %2272 = vmatprep.subr.bf16.mxu1 %v2625_v8 }
 0x5bc   : > { %v936_v5 = vpop.permute.xlu1 %935 }
 0x5bd   : > { %2269 = vmatmul.mubr.msk.bf16.vlgmr.msra.gmra.mxu0 %vm709_vm3, %v936_v5 }
 0x5be   : > { %2280 = vmatprep.mubr.msk.bf16.mxu0 %vm2626_vm1, %v2625_v8 }
 0x5c0   : > { %v987_v32 = vpop.permute.xlu1 %986 }
 0x5c1   : > { %v989_v33 = vmul.f32 %v987_v32, %v2872_v24 }
 0x5c6   : > { %v2482_v6 = vpop.eup %2481 }
 0x5c7   : > { %v874_v7 = vsel %vm709_vm3, %v2482_v6, 0.0 }
 0x5c8   : > { %875 = vadd.xlane.f32.xlu0 %v874_v7  ;;  %v1209_v7 = vsel %vm713_vm2, %v929_v4, 0 }
 0x5de   : > { %990 = vrot.lane.b32.xlu0 %v2876_v26, %s2632_s26 }
 0x651   : > { %v876_v9 = vpop.xlane.xlu0 %875 }
 0x652   : > { %2483 = vrcp.f32 %v876_v9 }
 0x655   : > { %v991_v13 = vpop.permute.xlu0 %990 }
 0x65f   : > { %v2484_v10 = vpop.eup %2483 }
 0x660   : > { %v878_v11 = vmul.f32 %v2484_v10, %v2482_v6 }
 0x662   : > { %v879_v12 = vpack.c.bf16 %v878_v11, %v878_v11 }
 0x664   : > { %2263 = vmatmul.mubr.msk.bf16.vlgmr.msra.gmra.mxu1 %vm709_vm3, %v879_v12 }
 0x665   : > { %2273 = vmatpush3.bf16.msra.mxu1 %v2865_v21  ;;  %2274 = vmatprep.mubr.msk.bf16.mxu1 %vm2626_vm1, %v2625_v8 }
 0x666   : > { %2284 = vmatprep.subr.bf16.mxu1 %v2625_v8 }
 0x66c   : > { %2275 = vmatmul.mubr.msk.bf16.vlgmr.msra.gmra.mxu1 %vm709_vm3, %v991_v13 }
 0x66d   : > { %2286 = vmatprep.mubr.msk.bf16.mxu1 %vm2626_vm1, %v2625_v8 }
 0x67d   : > { %v974_v14 = vpop.f32.mrf.mxu0 }
 0x67e   : > { %v980_v31 = vmul.f32 %v974_v14, %v2898_v46 }
 0x67f   : > { %v2270_v15 = vpop.f32.mrf.mxu0 }
 0x681   : > { %v977_v16 = vpop.f32.mrf.mxu0 }
 0x683   : > { %v2271_v17 = vpop.f32.mrf.mxu0 }
 0x724   : > { %v2946_v18 = vpop.f32.mrf.mxu1 }
 0x725   : > { %v928_v9 = vpack.c.bf16 %v2946_v18, %v2946_v18 }
 0x726   : > { %v2264_v19 = vpop.f32.mrf.mxu1 }
 0x728   : > { %v925_v20 = vpop.f32.mrf.mxu1 }
 0x72a   : > { %v2265_v22 = vpop.f32.mrf.mxu1 }
 0x72c   : > { %v1029_v23 = vpop.f32.mrf.mxu1 }
 0x72d   : > { %v1035_v25 = vmul.f32 %v1029_v23, %v2891_v35 }
 0x72e   : > { %v2276_v27 = vpop.f32.mrf.mxu1 }
 0x72f   : > { %1037 = vrot.lane.b32.xlu1 %v1035_v25, %s3236_s1  ;;  %s2639_s1 = smov 72  }
 0x730   : > { %v1032_v28 = vpop.f32.mrf.mxu1 }
 0x732   : > { %v2277_v30 = vpop.f32.mrf.mxu1 }
 0x733   : > { %931 = vrot.lane.b32.xlu1 %v2903_v47, %s2633_s24 }
 0x737   : > { %982 = vrot.lane.b32.xlu1 %v980_v31, %s2633_s24 }
 0x7a1   : > { %v1038_v34 = vpop.permute.xlu1 %1037 }
 0x7a2   : > { %v1040_v36 = vadd.f32 %v1038_v34, %v989_v33 }
 0x7a4   : > { %v1042_v37 = vpack.c.bf16 %v1040_v36, %v1040_v36 }
 0x7a5   : > { %v932_v38 = vpop.permute.xlu1 %931 }
 0x7a6   : > { %1047 = vrot.lane.b32.xlu0 %v1042_v37, %s2632_s26  ;;  %v934_v39 = vmul.f32 %v932_v38, %v2872_v24 }
 0x7a9   : > { %v983_v40 = vpop.permute.xlu1 %982 }
 0x7aa   : > { %v985_v41 = vadd.f32 %v983_v40, %v934_v39 }
 0x7ac   : > { %v1041_v42 = vpack.c.bf16 %v985_v41, %v985_v41 }
 0x7ae   : > { %1044 = vrot.lane.b32.xlu1 %v1041_v42, %s2630_s29  ;;  %s2176_s29 = sshll.u32 %s2759_s0, 7 }
 0x7af   : > { %s3169_s3 = scalar_lea.hbm %s3229_s18, %s2176_s29 }
 0x818   : > { %v1048_v43 = vpop.permute.xlu0 %1047 }
 0x819   : > { %v1053_v44 = vsel %vm709_vm3, %v1048_v43, 0 }
 0x81a   : > { %2279 = vmatpush3.bf16.xpose.msra.mxu0 %v1053_v44 }
 0x81b   : > { %2290 = vmatprep.subr.bf16.mxu0 %v2625_v8 }
 0x820   : > { %v1045_v45 = vpop.permute.xlu1 %1044 }
 0x821   : > { %2281 = vmatmul.mubr.msk.bf16.vlgmr.msra.gmra.mxu0 %vm709_vm3, %v1045_v45 }
 0x822   : > { %2292 = vmatprep.mubr.msk.bf16.mxu0 %vm2626_vm1, %v2625_v8  ;;  %2291 = vmatpush3.bf16.msra.mxu0 %v1163_v1 }
 0x823   : > { %2302 = vmatprep.subr.bf16.mxu0 %v2625_v8 }
 0x8e1   : > { %v1089_v48 = vpop.f32.mrf.mxu0 }
 0x8e2   : > { %v1095_v49 = vsel %vm608_vm4, %v1089_v48, -1e+30 }
 0x8e3   : > { %v2282_v50 = vpop.f32.mrf.mxu0  ;;  %v1096_v51 = vsel %vm709_vm3, %v1095_v49, -inf }
 0x8e4   : > { %1097 = vmax.xlane.f32.xlu0 %v1096_v51 }
 0x8e5   : > { %v1092_v52 = vpop.f32.mrf.mxu0 }
 0x8e7   : > { %v2283_v53 = vpop.f32.mrf.mxu0 }
 0x8fa   : > { %1108 = vrot.lane.b32.xlu0 %v2876_v26, %s2634_s20 }
 0x8fe   : > { %1255 = vrot.lane.b32.xlu0 %v2876_v26, %s2635_s21 }
 0x96d   : > { %v1098_v54 = vpop.xlane.xlu0 %1097 }
 0x96e   : > { %v1099_v57 = vsub.f32 %v1095_v49, %v1098_v54 }
 0x970   : > { %v1100_v58 = vmul.f32 1.442695, %v1099_v57 }
 0x971   : > { %v1109_v59 = vpop.permute.xlu0 %1108 }
 0x972   : > { %2485 = vpow2.f32 %v1100_v58  ;;  %v1114_v60 = vsel %vm713_vm2, %v1109_v59, 0 }
 0x973   : > { %2285 = vmatpush3.bf16.msra.mxu1 %v1114_v60 }
 0x974   : > { %2296 = vmatprep.subr.bf16.mxu1 %v2625_v8 }
 0x975   : > { %v1256_v17 = vpop.permute.xlu0 %1255 }
 0x97f   : > { %v2486_v61 = vpop.eup %2485 }
 0x980   : > { %v1102_v62 = vsel %vm709_vm3, %v2486_v61, 0.0 }
 0x981   : > { %1103 = vadd.xlane.f32.xlu1 %v1102_v62 }
 0x992   : > { %1310 = vrot.lane.b32.xlu1 %v2876_v26, %s2636_s25 }
 0x996   : > { %1306 = vrot.lane.b32.xlu1 %v2881_v29, %s2637_s19 }
 0x99a   : > { %1251 = vrot.lane.b32.xlu1 %v2903_v47, %s2638_s22 }
 0xa0a   : > { %v1104_v2 = vpop.xlane.xlu1 %1103 }
 0xa0b   : > { %2487 = vrcp.f32 %v1104_v2 }
 0xa0e   : > { %v1311_v10 = vpop.permute.xlu1 %1310 }
 0xa12   : > { %v1307_v30 = vpop.permute.xlu1 %1306 }
 0xa13   : > { %v1309_v31 = vmul.f32 %v1307_v30, %v2872_v24 }
 0xa16   : > { %v1252_v45 = vpop.permute.xlu1 %1251 }
 0xa17   : > { %v1254_v50 = vmul.f32 %v1252_v45, %v2872_v24 }
 0xa18   : > { %v2488_v3 = vpop.eup %2487 }
 0xa19   : > { %v1106_v5 = vmul.f32 %v2488_v3, %v2486_v61 }
 0xa1b   : > { %v1107_v6 = vpack.c.bf16 %v1106_v5, %v1106_v5  ;;  %v2151_v5 = vld [vmem:[%s3221_s10 + $0x8] sm:$0xf] }
 0xa1d   : > { %2287 = vmatmul.mubr.msk.bf16.vlgmr.msra.gmra.mxu1 %vm709_vm3, %v1107_v6  ;;  %v1483_v6 = vsel %vm713_vm2, %v2151_v5, 0 }
 0xa1e   : > { %2297 = vmatpush3.bf16.msra.mxu1 %v1209_v7  ;;  %2298 = vmatprep.mubr.msk.bf16.mxu1 %vm2626_vm1, %v2625_v8 }
 0xa1f   : > { %2308 = vmatprep.subr.bf16.mxu1 %v2625_v8 }
 0xa25   : > { %2299 = vmatmul.mubr.msk.bf16.vlgmr.msra.gmra.mxu1 %vm709_vm3, %v928_v9 }
 0xa26   : > { %2309 = vmatpush3.bf16.msra.mxu1 %v2865_v21  ;;  %2310 = vmatprep.mubr.msk.bf16.mxu1 %vm2626_vm1, %v2625_v8 }
 0xa27   : > { %2320 = vmatprep.subr.bf16.mxu1 %v2625_v8 }
 0xa2d   : > { %2311 = vmatmul.mubr.msk.bf16.vlgmr.msra.gmra.mxu1 %vm709_vm3, %v1311_v10 }
 0xa2e   : > { %2322 = vmatprep.mubr.msk.bf16.mxu1 %vm2626_vm1, %v2625_v8 }
 0xadd   : > { %v1150_v11 = vpop.f32.mrf.mxu1 }
 0xade   : > { %v1156_v12 = vpack.c.bf16 %v1150_v11, %v1150_v11 }
 0xadf   : > { %v2288_v13 = vpop.f32.mrf.mxu1 }
 0xae0   : > { %2293 = vmatmul.mubr.msk.bf16.vlgmr.msra.gmra.mxu0 %vm709_vm3, %v1156_v12 }
 0xae1   : > { %v1153_v14 = vpop.f32.mrf.mxu1  ;;  %2303 = vmatpush3.bf16.msra.mxu0 %v2865_v21  ;;  %2304 = vmatprep.mubr.msk.bf16.mxu0 %vm2626_vm1, %v2625_v8 }
 0xae2   : > { %2314 = vmatprep.subr.bf16.mxu0 %v2625_v8 }
 0xae3   : > { %v2289_v15 = vpop.f32.mrf.mxu1 }
 0xae5   : > { %v3006_v16 = vpop.f32.mrf.mxu1 }
 0xae7   : > { %v2300_v18 = vpop.f32.mrf.mxu1 }
 0xae8   : > { %2305 = vmatmul.mubr.msk.bf16.vlgmr.msra.gmra.mxu0 %vm709_vm3, %v1256_v17 }
 0xae9   : > { %v1248_v19 = vpop.f32.mrf.mxu1  ;;  %2316 = vmatprep.mubr.msk.bf16.mxu0 %vm2626_vm1, %v2625_v8 }
 0xaeb   : > { %v2301_v20 = vpop.f32.mrf.mxu1 }
 0xaed   : > { %v1349_v22 = vpop.f32.mrf.mxu1 }
 0xaee   : > { %v1355_v23 = vmul.f32 %v1349_v22, %v2891_v35 }
 0xaef   : > { %v2312_v25 = vpop.f32.mrf.mxu1 }
 0xaf0   : > { %1357 = vrot.lane.b32.xlu0 %v1355_v23, %s2637_s19 }
 0xaf1   : > { %v1352_v27 = vpop.f32.mrf.mxu1 }
 0xaf3   : > { %v2313_v28 = vpop.f32.mrf.mxu1 }
 0xb62   : > { %v1358_v32 = vpop.permute.xlu0 %1357 }
 0xb63   : > { %v1360_v33 = vadd.f32 %v1358_v32, %v1309_v31 }
 0xb65   : > { %v1362_v34 = vpack.c.bf16 %v1360_v33, %v1360_v33 }
 0xb67   : > { %1367 = vrot.lane.b32.xlu1 %v1362_v34, %s2636_s25  ;;  %s2641_s25 = smov 24  }
 0xba0   : > { %v3015_v36 = vpop.f32.mrf.mxu0 }
 0xba1   : > { %v1246_v27 = vadd.f32 %v3006_v16, %v3015_v36 }
 0xba2   : > { %v2294_v37 = vpop.f32.mrf.mxu0 }
 0xba4   : > { %v1202_v38 = vpop.f32.mrf.mxu0 }
 0xba6   : > { %v2295_v39 = vpop.f32.mrf.mxu0 }
 0xba8   : > { %v1294_v40 = vpop.f32.mrf.mxu0 }
 0xba9   : > { %v1300_v41 = vmul.f32 %v1294_v40, %v2898_v46 }
 0xbaa   : > { %v2306_v42 = vpop.f32.mrf.mxu0 }
 0xbab   : > { %1302 = vrot.lane.b32.xlu0 %v1300_v41, %s2638_s22 }
 0xbac   : > { %v1297_v43 = vpop.f32.mrf.mxu0 }
 0xbae   : > { %v2307_v44 = vpop.f32.mrf.mxu0 }
 0xbd9   : > { %v1368_v48 = vpop.permute.xlu1 %1367 }
 0xbda   : > { %v1373_v49 = vsel %vm709_vm3, %v1368_v48, 0 }
 0xbdb   : > { %2315 = vmatpush3.bf16.xpose.msra.mxu0 %v1373_v49 }
 0xbdc   : > { %2326 = vmatprep.subr.bf16.mxu0 %v2625_v8 }
 0xc1d   : > { %v1303_v51 = vpop.permute.xlu0 %1302 }
 0xc1e   : > { %v1305_v52 = vadd.f32 %v1303_v51, %v1254_v50 }
 0xc20   : > { %v1361_v53 = vpack.c.bf16 %v1305_v52, %v1305_v52 }
 0xc22   : > { %1364 = vrot.lane.b32.xlu0 %v1361_v53, %s2635_s21  ;;  %s2640_s21 = smov 104  }
 0xc94   : > { %v1365_v54 = vpop.permute.xlu0 %1364 }
 0xc95   : > { %2317 = vmatmul.mubr.msk.bf16.vlgmr.msra.gmra.mxu0 %vm709_vm3, %v1365_v54 }
 0xc96   : > { %2328 = vmatprep.mubr.msk.bf16.mxu0 %vm2626_vm1, %v2625_v8  ;;  %2327 = vmatpush3.bf16.msra.mxu0 %v1483_v6 }
 0xc97   : > { %2338 = vmatprep.subr.bf16.mxu0 %v2625_v8 }
 0xd55   : > { %v1409_v57 = vpop.f32.mrf.mxu0 }
 0xd56   : > { %v1415_v58 = vsel %vm608_vm4, %v1409_v57, -1e+30 }
 0xd57   : > { %v2318_v59 = vpop.f32.mrf.mxu0  ;;  %v1416_v60 = vsel %vm709_vm3, %v1415_v58, -inf }
 0xd58   : > { %1417 = vmax.xlane.f32.xlu1 %v1416_v60 }
 0xd59   : > { %v1412_v61 = vpop.f32.mrf.mxu0 }
 0xd5b   : > { %v2319_v62 = vpop.f32.mrf.mxu0 }
 0xd69   : > { %1585 = vrot.lane.b32.xlu1 %v2876_v26, %s2639_s1 }
 0xd6d   : > { %1530 = vrot.lane.b32.xlu1 %v2876_v26, %s2640_s21 }
 0xde1   : > { %v1418_v63 = vpop.xlane.xlu1 %1417 }
 0xde2   : > { %v1419_v1 = vsub.f32 %v1415_v58, %v1418_v63 }
 0xde4   : > { %v1420_v2 = vmul.f32 1.442695, %v1419_v1  ;;  %v2157_v1 = vld [vmem:[%s3221_s10 + $0xc] sm:$0xf] }
 0xde5   : > { %v1586_v12 = vpop.permute.xlu1 %1585 }
 0xde6   : > { %2489 = vpow2.f32 %v1420_v2 }
 0xde9   : > { %v1531_v13 = vpop.permute.xlu1 %1530 }
 0xdf3   : > { %v2490_v3 = vpop.eup %2489 }
 0xdf4   : > { %v1422_v4 = vsel %vm709_vm3, %v2490_v3, 0.0 }
 0xdf5   : > { %1423 = vadd.xlane.f32.xlu0 %v1422_v4 }
 0xe0b   : > { %1428 = vrot.lane.b32.xlu0 %v2876_v26, %s2637_s19 }
 0xe0f   : > { %1581 = vrot.lane.b32.xlu0 %v2881_v29, %s2634_s20 }
 0xe13   : > { %1526 = vrot.lane.b32.xlu0 %v2903_v47, %s2641_s25 }
 0xe7e   : > { %v1424_v7 = vpop.xlane.xlu0 %1423 }
 0xe7f   : > { %2491 = vrcp.f32 %v1424_v7 }
 0xe82   : > { %v1429_v9 = vpop.permute.xlu0 %1428 }
 0xe83   : > { %v1434_v10 = vsel %vm713_vm2, %v1429_v9, 0 }
 0xe84   : > { %2321 = vmatpush3.bf16.msra.mxu1 %v1434_v10 }
 0xe85   : > { %2332 = vmatprep.subr.bf16.mxu1 %v2625_v8 }
 0xe86   : > { %v1582_v41 = vpop.permute.xlu0 %1581 }
 0xe87   : > { %v1584_v16 = vmul.f32 %v1582_v41, %v2872_v24 }
 0xe8a   : > { %v1527_v36 = vpop.permute.xlu0 %1526 }
 0xe8b   : > { %v1529_v44 = vmul.f32 %v1527_v36, %v2872_v24  ;;  %v2473_v36 = vld [vmem:[%s3227_s16 + $0x28] sm:$0xff]  }
 0xe8c   : > { %v2492_v29 = vpop.eup %2491 }
 0xe8d   : > { %v1426_v11 = vmul.f32 %v2492_v29, %v2490_v3 }
 0xe8f   : > { %v1427_v47 = vpack.c.bf16 %v1426_v11, %v1426_v11 }
 0xe91   : > { %2323 = vmatmul.mubr.msk.bf16.vlgmr.msra.gmra.mxu1 %vm709_vm3, %v1427_v47 }
 0xe92   : > { %2333 = vmatpush3.bf16.msra.mxu1 %v2865_v21  ;;  %2334 = vmatprep.mubr.msk.bf16.mxu1 %vm2626_vm1, %v2625_v8 }
 0xe93   : > { %2344 = vmatprep.subr.bf16.mxu1 %v2625_v8 }
 0xe99   : > { %2335 = vmatmul.mubr.msk.bf16.vlgmr.msra.gmra.mxu1 %vm709_vm3, %v1531_v13 }
 0xe9a   : > { %2346 = vmatprep.mubr.msk.bf16.mxu1 %vm2626_vm1, %v2625_v8 }
 0xf51   : > { %v1470_v14 = vpop.f32.mrf.mxu1 }
 0xf52   : > { %v1476_v15 = vpack.c.bf16 %v1470_v14, %v1470_v14 }
 0xf53   : > { %v2324_v17 = vpop.f32.mrf.mxu1 }
 0xf54   : > { %2329 = vmatmul.mubr.msk.bf16.vlgmr.msra.gmra.mxu0 %vm709_vm3, %v1476_v15 }
 0xf55   : > { %v1473_v18 = vpop.f32.mrf.mxu1  ;;  %2339 = vmatpush3.bf16.msra.mxu0 %v2865_v21  ;;  %2340 = vmatprep.mubr.msk.bf16.mxu0 %vm2626_vm1, %v2625_v8 }
 0xf56   : > { %2350 = vmatprep.subr.bf16.mxu0 %v2625_v8 }
 0xf57   : > { %v2325_v19 = vpop.f32.mrf.mxu1 }
 0xf59   : > { %v1569_v20 = vpop.f32.mrf.mxu1 }
 0xf5a   : > { %v1575_v39 = vmul.f32 %v1569_v20, %v2898_v46 }
 0xf5b   : > { %v2336_v22 = vpop.f32.mrf.mxu1 }
 0xf5c   : > { %2341 = vmatmul.mubr.msk.bf16.vlgmr.msra.gmra.mxu0 %vm709_vm3, %v1586_v12  ;;  %v2159_v12 = vld [vmem:[%s3222_s11] ss:$0 sm:$0xff] }
 0xf5d   : > { %v1572_v23 = vpop.f32.mrf.mxu1  ;;  %2352 = vmatprep.mubr.msk.bf16.mxu0 %vm2626_vm1, %v2625_v8 }
 0xf5f   : > { %v2337_v25 = vpop.f32.mrf.mxu1 }
0x1014   : > { %v1519_v28 = vpop.f32.mrf.mxu0 }
0x1015   : > { %v3066_v21 = vadd.f32 %v1519_v28, %v1246_v27  ;;  %v2470_v28 = vld [vmem:[%s3225_s14] sm:$0xff]  }
0x1016   : > { %v2330_v30 = vpop.f32.mrf.mxu0 }
0x1017   : > { %v2472_v30 = vld [vmem:[%s3227_s16 + $0x30] sm:$0xff]  }
0x1018   : > { %v1522_v31 = vpop.f32.mrf.mxu0 }
0x101a   : > { %v2331_v32 = vpop.f32.mrf.mxu0 }
0x101c   : > { %v1624_v33 = vpop.f32.mrf.mxu0 }
0x101d   : > { %v1630_v34 = vmul.f32 %v1624_v33, %v2891_v35 }
0x101e   : > { %v2342_v37 = vpop.f32.mrf.mxu0 }
0x101f   : > { %1632 = vrot.lane.b32.xlu1 %v1630_v34, %s2634_s20  ;;  %s3259_s20 = smov 40   ;;  %v2160_v37 = vld [vmem:[%s3223_s12] ss:$0 sm:$0xff] }
0x1020   : > { %v1627_v38 = vpop.f32.mrf.mxu0 }
0x1022   : > { %v2343_v40 = vpop.f32.mrf.mxu0 }
0x1023   : > { %1577 = vrot.lane.b32.xlu1 %v1575_v39, %s2641_s25  ;;  %v2161_v39 = vld [vmem:[%s3224_s13] ss:$0 sm:$0xff]  ;;  %s2642_s25 = smov [#allocation7]  }
0x1024   : > { %s2557_s22 = sshll.u32 %s2642_s25, 4  ;;  %s2558_s22 = int_to_ptr.vmem [resolvable:$false] %s2557_s22 }
0x1025   : > { %s2559_s29 = scalar_lea.vmem %s2558_s22, 256 }
0x1091   : > { %v1633_v42 = vpop.permute.xlu1 %1632 }
0x1092   : > { %v1635_v43 = vadd.f32 %v1633_v42, %v1584_v16  ;;  %v2474_v42 = vld [vmem:[%s3227_s16 + $0x20] sm:$0xff]  }
0x1094   : > { %v1637_v45 = vpack.c.bf16 %v1635_v43, %v1635_v43  ;;  %v2475_v43 = vld [vmem:[%s3227_s16 + $0x18] sm:$0xff]  }
0x1095   : > { %v1578_v48 = vpop.permute.xlu1 %1577 }
0x1096   : > { %v1580_v35 = vadd.f32 %v1578_v48, %v1529_v44  ;;  %1642 = vrot.lane.b32.xlu0 %v1637_v45, %s2639_s1  ;;  %v2476_v44 = vld [vmem:[%s3227_s16 + $0x10] sm:$0xff]   ;;  %v2477_v45 = vld [vmem:[%s3227_s16 + $0x8] sm:$0xff]   ;;  %v2478_v48 = vld [vmem:[%s3227_s16] sm:$0xff]   ;;  %s590_s1 = sand.u32 1, %s2613_s28  }
0x1097   : > { %s2026_s0 = scalar_lea.sflag [#allocation4], %s590_s1 }
0x1098   : > { %v1636_v49 = vpack.c.bf16 %v1580_v35, %v1580_v35  ;;  %v2162_v35 = vld [vmem:[%s3226_s15] ss:$0 sm:$0xff] }
0x109a   : > { %1639 = vrot.lane.b32.xlu1 %v1636_v49, %s2640_s21  ;;  %s2128_s21 = sshll.u32 %s590_s1, 3 }
0x1108   : > { %v1643_v46 = vpop.permute.xlu0 %1642 }
0x1109   : > { %v1648_v50 = vsel %vm709_vm3, %v1643_v46, 0 }
0x110a   : > { %2345 = vmatpush3.bf16.xpose.msra.mxu1 %v1648_v50 }
0x110b   : > { %2356 = vmatprep.subr.bf16.mxu1 %v2625_v8 }
0x110c   : > { %v1640_v51 = vpop.permute.xlu1 %1639 }
0x1111   : > { %2347 = vmatmul.mubr.msk.bf16.vlgmr.msra.gmra.mxu1 %vm709_vm3, %v1640_v51 }
0x1112   : > { %2358 = vmatprep.mubr.msk.bf16.mxu1 %vm2626_vm1, %v2625_v8 }
0x11d1   : > { %v1684_v24 = vpop.f32.mrf.mxu1 }
0x11d2   : > { %v1690_v52 = vsel %vm608_vm4, %v1684_v24, -1e+30 }
0x11d3   : > { %v2348_v53 = vpop.f32.mrf.mxu1  ;;  %v1691_v54 = vsel %vm709_vm3, %v1690_v52, -inf }
0x11d4   : > { %1692 = vmax.xlane.f32.xlu0 %v1691_v54 }
0x11d5   : > { %v1687_v57 = vpop.f32.mrf.mxu1 }
0x11d7   : > { %v2349_v58 = vpop.f32.mrf.mxu1 }
0x11ea   : > { %1703 = vrot.lane.b32.xlu0 %v2876_v26, %s3259_s20  ;;  %v1758_v26 = vsel %vm713_vm2, %v2157_v1, 0  ;;  %s592_s20 = scalar_lea.vmem [#allocation7], %s2128_s21 }
0x11eb   : > { %2357 = vmatpush3.bf16.msra.mxu1 %v1758_v26  ;;  %s2039_s19 = sshll.u32 %s592_s20, 4  ;;  %s3171_s19 = int_to_ptr.vmem [resolvable:$true] %s2039_s19 }
0x11ec   : > { %2370 = vmatprep.subr.bf16.mxu1 %v2625_v8  ;;  %s2553_s21 = scalar_lea.vmem %s3171_s19, 128  ;;  %p2560_p8 = scmp.lt.s32.totalorder %s3171_s19, %s2558_s22 }
0x11ed   : > { %p2554_p10 = scmp.ne.s32.totalorder %s3171_s19, %s2553_s21  ;;  %p2561_p11 = scmp.lt.s32.totalorder %s2559_s29, %s2553_s21 }
0x11ef   : > { %p2555_p4 = pnand %p2554_p10, %p3260_p12  ;;  %p2562_p0 = por %p2561_p11, %p2560_p8 }
0x11f1   : > { %p2556_p7 = pneg %p2555_p4 }
0x11f3   : > { %p2563_p1 = pnand %p2562_p0, %p2556_p7 }
0x125d   : > { %v1693_v59 = vpop.xlane.xlu0 %1692 }
0x125e   : > { %v1694_v60 = vsub.f32 %v1690_v52, %v1693_v59  ;;  %v2166_v59 = vld [vmem:[%s3228_s17] ss:$0 sm:$0xff] }
0x1260   : > { %v1695_v61 = vmul.f32 1.442695, %v1694_v60 }
0x1261   : > { %v1704_v62 = vpop.permute.xlu0 %1703 }
0x1262   : > { %2493 = vpow2.f32 %v1695_v61  ;;  %v1709_v63 = vsel %vm713_vm2, %v1704_v62, 0 }
0x1263   : > { %2351 = vmatpush3.bf16.msra.mxu0 %v1709_v63 }
0x1264   : > { %2362 = vmatprep.subr.bf16.mxu0 %v2625_v8 }
0x126f   : > { %v2494_v55 = vpop.eup %2493 }
0x1270   : > { %v1697_v56 = vsel %vm709_vm3, %v2494_v55, 0.0 }
0x1271   : > { %1698 = vadd.xlane.f32.xlu1 %v1697_v56 }
0x12fa   : > { %v1699_v2 = vpop.xlane.xlu1 %1698 }
0x12fb   : > { %2495 = vrcp.f32 %v1699_v2 }
0x1308   : > { %v2496_v3 = vpop.eup %2495 }
0x1309   : > { %v1701_v4 = vmul.f32 %v2496_v3, %v2494_v55 }
0x130b   : > { %v1702_v5 = vpack.c.bf16 %v1701_v4, %v1701_v4 }
0x130d   : > { %2353 = vmatmul.mubr.msk.bf16.vlgmr.msra.gmra.mxu0 %vm709_vm3, %v1702_v5 }
0x130e   : > { %2366 = vmatprep.mubr.msk.bf16.mxu0 %vm2626_vm1, %v2625_v8 }
0x13cd   : > { %v1745_v6 = vpop.f32.mrf.mxu0 }
0x13ce   : > { %v1751_v7 = vpack.c.bf16 %v1745_v6, %v1745_v6 }
0x13cf   : > { %v2354_v9 = vpop.f32.mrf.mxu0 }
0x13d0   : > { %2359 = vmatmul.mubr.msk.bf16.vlgmr.msra.gmra.mxu1 %vm709_vm3, %v1751_v7 }
0x13d1   : > { %v1748_v10 = vpop.f32.mrf.mxu0  ;;  %2386 = vmatprep.mubr.msk.bf16.mxu1 %vm2626_vm1, %v2625_v8 }
0x13d3   : > { %v2355_v29 = vpop.f32.mrf.mxu0 }
0x1490   : > { %v1794_v11 = vpop.f32.mrf.mxu1 }
0x1491   : > { %v1800_v47 = vadd.f32 %v1794_v11, %v3066_v21  ;;  %v2471_v21 = vld [vmem:[%s3227_s16 + $0x38] sm:$0xff]  }
0x1492   : > { %v2360_v13 = vpop.f32.mrf.mxu1  ;;  %2371 = vmatpush3.bf16.msra.mxu1 %v2471_v21 }
0x1493   : > { %v1801_v14 = vadd.f32 %v1800_v47, %v2832_v0  ;;  %v2469_v0 = vld [vmem:[%s3225_s14 + $0x8] sm:$0xff]   ;;  %2372 = vmatprep.subr.bf16.mxu1 %v2625_v8 }
0x1494   : > { %v1797_v15 = vpop.f32.mrf.mxu1  ;;  %2363 = vmatpush3.bf16.msra.mxu0 %v2469_v0 }
0x1495   : > { %v3106_v17 = vadd.f32 %v2159_v12, %v1801_v14  ;;  %2364 = vmatprep.subr.bf16.mxu0 %v2625_v8 }
0x1496   : > { %v2361_v18 = vpop.f32.mrf.mxu1  ;;  %2373 = vmatpush3.bf16.msra.mxu1 %v2472_v30 }
0x1497   : > { %v1812_v19 = vsel %vm611_vm0, %v3106_v17, 0.0  ;;  %2374 = vmatprep.subr.bf16.mxu1 %v2625_v8 }
0x1498   : > { %1813 = vadd.xlane.f32.xlu1 %v1812_v19  ;;  %2365 = vmatpush3.bf16.msra.mxu0 %v2470_v28 }
0x149a   : > { %2375 = vmatpush3.bf16.msra.mxu1 %v2473_v36 }
0x149b   : > { %2376 = vmatprep.subr.bf16.mxu1 %v2625_v8 }
0x149e   : > { %2377 = vmatpush3.bf16.msra.mxu1 %v2474_v42 }
0x149f   : > { %2378 = vmatprep.subr.bf16.mxu1 %v2625_v8 }
0x14a2   : > { %2379 = vmatpush3.bf16.msra.mxu1 %v2475_v43 }
0x14a3   : > { %2380 = vmatprep.subr.bf16.mxu1 %v2625_v8 }
0x14a6   : > { %2381 = vmatpush3.bf16.msra.mxu1 %v2476_v44 }
0x14a7   : > { %2382 = vmatprep.subr.bf16.mxu1 %v2625_v8 }
0x14aa   : > { %2383 = vmatpush3.bf16.msra.mxu1 %v2477_v45 }
0x14ab   : > { %2384 = vmatprep.subr.bf16.mxu1 %v2625_v8 }
0x14ae   : > { %2385 = vmatpush3.bf16.msra.mxu1 %v2478_v48 }
0x1521   : > { %v1814_v20 = vpop.xlane.xlu1 %1813 }
0x1522   : > { %v1815_v22 = vmul.f32 0.03125, %v1814_v20 }
0x1524   : > { %v1816_v23 = vsub.f32 %v3106_v17, %v1815_v22 }
0x1526   : > { %v1817_v25 = vmul.f32 %v1816_v23, %v1816_v23 }
0x1528   : > { %v1818_v27 = vsel %vm611_vm0, %v1817_v25, 0.0 }
0x1529   : > { %1819 = vadd.xlane.f32.xlu1 %v1818_v27 }
0x15b2   : > { %v1820_v31 = vpop.xlane.xlu1 %1819 }
0x15b3   : > { %v1821_v32 = vmul.f32 0.03125, %v1820_v31 }
0x15b5   : > { %v1822_v33 = vadd.f32 1e-05, %v1821_v32 }
0x15b7   : > { %2497 = vrsqrt.f32 %v1822_v33 }
0x15c4   : > { %v2498_v34 = vpop.eup %2497 }
0x15c5   : > { %v1824_v38 = vmul.f32 %v2498_v34, %v1816_v23 }
0x15c7   : > { %v1831_v40 = vmul.f32 %v2160_v37, %v1824_v38 }
0x15c9   : > { %v1838_v41 = vadd.f32 %v2161_v39, %v1831_v40 }
0x15cb   : > { %v1839_v16 = vpack.c.bf16 %v1838_v41, %v1838_v41 }
0x15cd   : > { %2367 = vmatmul.mubr.msk.bf16.vlgmr.msra.gmra.mxu0 %vm611_vm0, %v1839_v16 }
0x168d   : > { %v1900_v49 = vpop.f32.mrf.mxu0 }
0x168e   : > { %v1901_v46 = vadd.f32 %v2162_v35, %v1900_v49 }
0x168f   : > { %v2368_v50 = vpop.f32.mrf.mxu0 }
0x1690   : > { %v1907_v51 = vmul.f32 0.70710677, %v1901_v46  ;;  %v1906_v8 = vmul.f32 0.5, %v1901_v46 }
0x1691   : > { %v1903_v24 = vpop.f32.mrf.mxu0 }
0x1692   : > { %2499 = verf.f32 %v1907_v51 }
0x1693   : > { %v2369_v52 = vpop.f32.mrf.mxu0 }
0x169f   : > { %v2500_v53 = vpop.eup %2499 }
0x16a0   : > { %v1909_v54 = vadd.f32 1.0, %v2500_v53 }
0x16a2   : > { %v1910_v57 = vmul.f32 %v1909_v54, %v1906_v8 }
0x16a4   : > { %v1911_v58 = vpack.c.bf16 %v1910_v57, %v1910_v57 }
0x16a6   : > { %2387 = vmatmul.mubr.bf16.vlgmr.msra.gmra.mxu1 %v1911_v58 }
0x1766   : > { %v2017_v60 = vpop.f32.mrf.mxu1 }
0x1767   : > { %v2018_v61 = vadd.f32 %v2166_v59, %v2017_v60 }
0x1768   : > { %v2388_v62 = vpop.f32.mrf.mxu1 }
0x1769   : > { %v2023_v63 = vadd.f32 %v2018_v61, %v3106_v17 }
0x176a   : > { %v2020_v55 = vpop.f32.mrf.mxu1 }
0x176b   : > { %2024 = vst.msk [vmem:[%s592_s20] sm:$0xff] %vm611_vm0, %v2023_v63 }
0x176c   : > { %v2389_v56 = vpop.f32.mrf.mxu1 }
0x176d   : > { %2566 = shalt.err (!%p2563_p1)
}
0x176e   : > { %s2567_s20 = scalar_lea.hbm %s3169_s3, 128  ;;  %s2571_s24 = scalar_lea.hbm %s3229_s18, 256 }
0x176f   : > { %p2568_p2 = scmp.ne.s32.totalorder %s3169_s3, %s2567_s20  ;;  %p2572_p9 = scmp.lt.s32.totalorder %s3169_s3, %s3229_s18 }
0x1770   : > { %p2573_p5 = scmp.lt.s32.totalorder %s2571_s24, %s2567_s20 }
0x1771   : > { %p2569_p3 = pnand %p2568_p2, %p3260_p12 }
0x1772   : > { %p2574_p6 = por %p2573_p5, %p2572_p9 }
0x1773   : > { %p2570_p13 = pneg %p2569_p3 }
0x1775   : > { %p2575_p10 = pnand %p2574_p6, %p2570_p13 }
0x1777   : > { %2578 = shalt.err (!%p2575_p10)
}
0x1778   : > { %2398 = dma.vmem_to_hbm [thread:$0]  (%p3260_p12), %s3171_s19, 128, %s3169_s3, %s2026_s0  }
0x1779 PF: > { %p2415_p4 = scmp.ge.s32.totalorder %s2621_s30, 2  ;;  %s2051_s21 = sand.u32 1, %s2609_s27  }
0x177a   : > { %p3261_p7 = scmp.ne.s32.totalorder %s3246_s23, 0  ;;  %s2052_s4 = scalar_lea.sflag [#allocation4], %s2051_s21 }
0x177c   : > { %p2408_p8 = pnand %p2415_p4, %p3261_p7 }
0x177e   : > { %p2409_p11 = pneg %p2408_p8 }
0x1780   : > { %2604 = dma.done.wait (%p2409_p11), %s2052_s4, 128  }
0x1781   : > { %2606 = vsyncadd (%p2409_p11), %s2052_s4, 4294967168  ;;  %s3262_s30 = sld [smem:[#allocation12_spill]]  ;;  %s3265_s27 = smov %s2613_s28 }
0x1782   : > { %s3263_s22 = sld [smem:[#allocation11_spill]] }
0x1783   : > { %s3264_s29 = sld [smem:[#allocation13_spill]] }
0x1787   : > { %p30_p0 = scmp.ge.s32.totalorder %s3262_s30, 4  }
0x1788   : > { %s3266_s28 = smov %s3263_s22 }
0x1789   :  { %32 = sbr.rel (!%p30_p0) target bundleno = 11 (0xb), region = 139 }
0x178e   :  { %2057 = vsyncpa [#allocation3], 1 }
0x178f   :  { %2059 = vsyncpa [#allocation3 + $0x1], 1 }
0x1790   :  { %2060 = vsyncpa [#allocation6], 1 }
0x1791   :  { %2061 = vsyncpa [#allocation4], 1 }
0x1792   :  { %2063 = vsyncpa [#allocation4 + $0x1], 1 }

</bundles_post_ra>
